<compile_context>
chip_gen: v5e
topology: v5e:2x2
jax: 0.10.0
libtpu: 0.0.40
codegen_flags: <defaults>
</compile_context>

<pallas_src>
import functools

import jax
import jax.numpy as jnp
from jax.experimental import pallas as pl
from jax.experimental.pallas import tpu as pltpu

BN_EPS = 1e-5
LEAKY_SLOPE = 0.1
DROPOUT_P = 0.5
BN_MOMENTUM = 0.1


def _round_up(n, m):
    return ((n + m - 1) // m) * m


# --------------------------- eval (inference) path ---------------------------
def fc_eval_kernel(x_ref, w_ref, shift_ref, o_ref):
    # x_ref: (TB, D) f32   w_ref: (D, H) bf16 (BN scale pre-folded per column)
    # shift_ref: (1, H) f32 = (b - running_mean)*scale + beta   o_ref: (TB, H) f32
    h = jnp.dot(x_ref[...].astype(jnp.bfloat16), w_ref[...],
                preferred_element_type=jnp.float32)
    h = h + shift_ref[...]
    o_ref[...] = jnp.where(h >= 0.0, h, LEAKY_SLOPE * h).astype(o_ref.dtype)


@jax.jit
def fc_block_eval(eval_params, x):
    """x: (B, D) f32 -> (B, H) f32. Matches FcBlock.forward in eval mode."""
    w = eval_params["w_eval"]        # (D, H) bf16
    shift = eval_params["shift"]     # (1, H) f32
    B, D = x.shape
    H = w.shape[1]

    # Pad batch to full sublanes; tile it once it is large enough to pipeline.
    if B <= 256:
        tb = _round_up(B, 8)
        bp = tb
    else:
        tb = 256
        bp = _round_up(B, tb)
    xp = x if bp == B else jnp.pad(x, ((0, bp - B), (0, 0)))

    out = pl.pallas_call(
        fc_eval_kernel,
        out_shape=jax.ShapeDtypeStruct((bp, H), jnp.float32),
        grid=(bp // tb,),
        in_specs=[
            pl.BlockSpec((tb, D), lambda i: (i, 0)),  # x tiles pipeline over batch
            pl.BlockSpec((D, H), lambda i: (0, 0)),   # weight stays VMEM-resident
            pl.BlockSpec((1, H), lambda i: (0, 0)),   # fused shift
        ],
        out_specs=pl.BlockSpec((tb, H), lambda i: (i, 0)),
        compiler_params=pltpu.CompilerParams(dimension_semantics=("parallel",)),
        cost_estimate=pl.CostEstimate(
            flops=2 * bp * D * H,
            transcendentals=0,
            bytes_accessed=4 * bp * D + 2 * D * H + 4 * H + 4 * bp * H),
    )(xp, w, shift)
    return out if bp == B else out[:B]


# ------------------------------ training path --------------------------------
def fc_train_kernel(x_ref, w_ref, gb_ref, mask_ref, o_ref, mean_ref, var_ref,
                    *, n_valid: int):
    # x_ref: (Bp, D) f32   w_ref: (D, H) bf16   gb_ref: (2, H) f32 [gamma; beta]
    # mask_ref: (Bp, H) f32 inverted-dropout multipliers   o_ref: (Bp, H) f32
    h = jnp.dot(x_ref[...].astype(jnp.bfloat16), w_ref[...],
                preferred_element_type=jnp.float32)
    # Linear bias is omitted: it is exactly cancelled by the batch-mean subtraction.

    # Whole-batch (biased) BN statistics, ignoring padded rows.
    row = jax.lax.broadcasted_iota(jnp.int32, h.shape, 0)
    valid = row < n_valid
    cnt = float(n_valid)
    hm = jnp.where(valid, h, 0.0)
    mean = jnp.sum(hm, axis=0, keepdims=True) / cnt
    d = jnp.where(valid, h - mean, 0.0)
    var = jnp.sum(d * d, axis=0, keepdims=True) / cnt
    mean_ref[...] = mean
    var_ref[...] = var

    hn = (h - mean) * jax.lax.rsqrt(var + BN_EPS)
    hn = hn * gb_ref[0:1, :] + gb_ref[1:2, :]
    hn = jnp.where(hn >= 0.0, hn, LEAKY_SLOPE * hn)
    o_ref[...] = (hn * mask_ref[...]).astype(o_ref.dtype)


@jax.jit
def fc_block_train(params, x, dropout_key):
    """Training forward. Returns (out (B,H), new_running_mean, new_running_var)."""
    w = params["w"]                  # (D, H) bf16, pre-transposed
    B, D = x.shape
    H = w.shape[1]
    bp = _round_up(B, 8)
    xp = x if bp == B else jnp.pad(x, ((0, bp - B), (0, 0)))

    keep = jax.random.bernoulli(dropout_key, 1.0 - DROPOUT_P, (bp, H))
    mask = keep.astype(jnp.float32) * (1.0 / (1.0 - DROPOUT_P))
    gb = jnp.stack([params["gamma"], params["beta"]], axis=0)   # packed (2, H)

    kernel = functools.partial(fc_train_kernel, n_valid=B)
    vmem = lambda: pl.BlockSpec(memory_space=pltpu.MemorySpace.VMEM)
    out, mean, var = pl.pallas_call(
        kernel,
        out_shape=(jax.ShapeDtypeStruct((bp, H), jnp.float32),
                   jax.ShapeDtypeStruct((1, H), jnp.float32),
                   jax.ShapeDtypeStruct((1, H), jnp.float32)),
        in_specs=[vmem(), vmem(), vmem(), vmem()],
        out_specs=(vmem(), vmem(), vmem()),
    )(xp, w, gb, mask)

    out = out if bp == B else out[:B]
    # PyTorch BatchNorm1d running-stat update (momentum=0.1, unbiased var for running_var).
    batch_mean = mean[0] + params["b"]          # bias re-added (omitted inside the kernel)
    unbias = B / max(B - 1, 1)
    new_rm = (1.0 - BN_MOMENTUM) * params["running_mean"] + BN_MOMENTUM * batch_mean
    new_rv = (1.0 - BN_MOMENTUM) * params["running_var"] + BN_MOMENTUM * var[0] * unbias
    return out, new_rm, new_rv


# ------------------------------- params --------------------------------------
def init_fc_block_params(key, input_dim=1024, num_bottleneck=512):
    # weights_init_kaiming:
    #   Linear      : kaiming_normal(a=0, mode='fan_out') -> std = sqrt(2/out_features); bias = 0
    #   BatchNorm1d : weight ~ N(1, 0.02), bias = 0, running_mean = 0, running_var = 1
    kw, kg = jax.random.split(key)
    std = (2.0 / num_bottleneck) ** 0.5
    # Stored pre-transposed (D, H) and cast ONCE to bf16 (f32 accumulation in-kernel).
    w = (std * jax.random.normal(kw, (input_dim, num_bottleneck),
                                 jnp.float32)).astype(jnp.bfloat16)
    return {
        "w": w,
        "b": jnp.zeros((num_bottleneck,), jnp.float32),
        "gamma": 1.0 + 0.02 * jax.random.normal(kg, (num_bottleneck,), jnp.float32),
        "beta": jnp.zeros((num_bottleneck,), jnp.float32),
        "running_mean": jnp.zeros((num_bottleneck,), jnp.float32),
        "running_var": jnp.ones((num_bottleneck,), jnp.float32),
    }


def fold_eval_params(params):
    """One-time fold of Linear bias + BN (eval) into the weight + a single shift."""
    s = params["gamma"] * jax.lax.rsqrt(params["running_var"] + BN_EPS)      # (H,)
    w_eval = (params["w"].astype(jnp.float32) * s[None, :]).astype(jnp.bfloat16)
    shift = ((params["b"] - params["running_mean"]) * s + params["beta"]).reshape(1, -1)
    return {"w_eval": w_eval, "shift": shift.astype(jnp.float32)}


# --------------------------------- test ---------------------------------------
if __name__ == "__main__":
    key = jax.random.PRNGKey(0)
    k_x, k_p, k_d = jax.random.split(key, 3)

    B, D, H = 8, 1024, 512            # module defaults: input_dim=1024, num_bottleneck=512
    x = jax.random.normal(k_x, (B, D), jnp.float32)
    params = init_fc_block_params(k_p, input_dim=D, num_bottleneck=H)
    eval_params = fold_eval_params(params)

    # --- eval mode (deterministic): BN running stats, dropout = identity ---
    out = jax.block_until_ready(fc_block_eval(eval_params, x))
    assert out.shape == (B, H), out.shape

    # Tight reference: identical bf16 folded math.
    xb = x.astype(jnp.bfloat16)
    h = jnp.dot(xb, eval_params["w_eval"], preferred_element_type=jnp.float32)
    h = h + eval_params["shift"]
    ref = jnp.where(h >= 0.0, h, LEAKY_SLOPE * h)
    err = float(jnp.max(jnp.abs(out - ref)))
    assert err < 2e-3, f"eval mismatch vs bf16 reference, max abs diff = {err}"

    # Loose sanity check vs full-f32 PyTorch eval semantics (bf16 rounding only).
    hf = jnp.dot(x, params["w"].astype(jnp.float32),
                 precision=jax.lax.Precision.HIGHEST) + params["b"]
    hf = (hf - params["running_mean"]) / jnp.sqrt(params["running_var"] + BN_EPS)
    hf = hf * params["gamma"] + params["beta"]
    ref_f32 = jnp.where(hf >= 0.0, hf, LEAKY_SLOPE * hf)
    err32 = float(jnp.max(jnp.abs(out - ref_f32)))
    assert err32 < 1e-1, f"eval drift vs f32 semantics too large: {err32}"

    # --- training mode: whole-batch BN stats + inverted dropout + running-stat update ---
    out_tr, new_rm, new_rv = fc_block_train(params, x, k_d)
    out_tr = jax.block_until_ready(out_tr)
    assert out_tr.shape == (B, H), out_tr.shape
    assert new_rm.shape == (H,) and new_rv.shape == (H,)
    assert bool(jnp.all(jnp.isfinite(out_tr)))

    # Reference: same bf16 matmul, batch-stat BN, same dropout mask (same key & shape).
    ht = jnp.dot(xb, params["w"], preferred_element_type=jnp.float32) + params["b"]
    m = jnp.mean(ht, axis=0)
    v = jnp.mean((ht - m) ** 2, axis=0)
    hn = (ht - m) / jnp.sqrt(v + BN_EPS) * params["gamma"] + params["beta"]
    a = jnp.where(hn >= 0.0, hn, LEAKY_SLOPE * hn)
    keep = jax.random.bernoulli(k_d, 1.0 - DROPOUT_P, (B, H))   # bp == B for B=8
    ref_tr = a * keep.astype(jnp.float32) * (1.0 / (1.0 - DROPOUT_P))
    err_tr = float(jnp.max(jnp.abs(out_tr - ref_tr)))
    assert err_tr < 5e-3, f"training mismatch, max abs diff = {err_tr}"

    zero_frac = float(jnp.mean(out_tr == 0.0))
    assert 0.3 < zero_frac < 0.7, zero_frac   # ~50% of units dropped

    ref_rv = (1.0 - BN_MOMENTUM) * params["running_var"] + BN_MOMENTUM * v * (B / (B - 1))
    assert float(jnp.max(jnp.abs(new_rv - ref_rv))) < 5e-3

    print("KERNEL_OK")
</pallas_src>

<mosaic_0001>
module attributes {stable_mosaic.version = 11 : i64} {
  func.func @fc_eval_kernel(%arg0: i32, %arg1: memref<8x1024xf32, #tpu.memory_space<vmem>>, %arg2: memref<1024x512xbf16, #tpu.memory_space<vmem>>, %arg3: memref<1x512xf32, #tpu.memory_space<vmem>>, %arg4: memref<8x512xf32, #tpu.memory_space<vmem>>) attributes {dimension_semantics = [#tpu.dimension_semantics<parallel>], iteration_bounds = array<i64: 1>, scalar_prefetch = 0 : i64, scratch_operands = 0 : i64, tpu.core_type = #tpu.core_type<tc>, window_params = [{transform_indices = @transform_0, window_bounds = array<i64: 8, 1024>}, {pipeline_mode = #tpu.pipeline_mode<synchronous>, transform_indices = @transform_1, window_bounds = array<i64: 1024, 512>}, {pipeline_mode = #tpu.pipeline_mode<synchronous>, transform_indices = @transform_2, window_bounds = array<i64: 1, 512>}, {transform_indices = @transform_3, window_bounds = array<i64: 8, 512>}]} {
    %c0 = arith.constant 0 : index
    %c0_0 = arith.constant 0 : index
    %0 = vector.load %arg1[%c0, %c0_0] : memref<8x1024xf32, #tpu.memory_space<vmem>>, vector<8x1024xf32>
    %1 = arith.truncf %0 : vector<8x1024xf32> to vector<8x1024xbf16>
    %c0_1 = arith.constant 0 : index
    %c0_2 = arith.constant 0 : index
    %2 = vector.load %arg2[%c0_1, %c0_2] : memref<1024x512xbf16, #tpu.memory_space<vmem>>, vector<1024x512xbf16>
    %cst = arith.constant dense<0.000000e+00> : vector<8x512xf32>
    %3 = tpu.matmul %1, %2, %cst {dimension_numbers = #tpu.dot_dimension_numbers<[1], [0], [0], [1], [0, 0, 1, 1], [], []>} : vector<8x1024xbf16>, vector<1024x512xbf16>, vector<8x512xf32> -> vector<8x512xf32>
    %c0_3 = arith.constant 0 : index
    %c0_4 = arith.constant 0 : index
    %4 = vector.load %arg3[%c0_3, %c0_4] : memref<1x512xf32, #tpu.memory_space<vmem>>, vector<1x512xf32>
    %5 = vector.broadcast %4 : vector<1x512xf32> to vector<8x512xf32>
    %6 = arith.addf %3, %5 : vector<8x512xf32>
    %cst_5 = arith.constant 0.000000e+00 : f32
    %7 = vector.broadcast %cst_5 : f32 to vector<8x512xf32>
    %8 = arith.cmpf oge, %6, %7 : vector<8x512xf32>
    %cst_6 = arith.constant 1.000000e-01 : f32
    %9 = vector.broadcast %cst_6 : f32 to vector<8x512xf32>
    %10 = arith.mulf %9, %6 : vector<8x512xf32>
    %11 = arith.select %8, %6, %10 : vector<8x512xi1>, vector<8x512xf32>
    %c0_7 = arith.constant 0 : index
    %c0_8 = arith.constant 0 : index
    %12 = vector.load %arg4[%c0_7, %c0_8] : memref<8x512xf32, #tpu.memory_space<vmem>>, vector<8x512xf32>
    tpu.vector_store %arg4[%c0_7, %c0_8], %11 {strides = array<i32>} : memref<8x512xf32, #tpu.memory_space<vmem>>, vector<8x512xf32>,
    return
  }
  func.func @transform_0(%arg0: i32) -> (i32, i32) {
    %c0_i32 = arith.constant 0 : i32
    %c0_i32_0 = arith.constant 0 : i32
    return %arg0, %c0_i32 : i32, i32
  }
  func.func @transform_1(%arg0: i32) -> (i32, i32) {
    %c0_i32 = arith.constant 0 : i32
    %c0_i32_0 = arith.constant 0 : i32
    %c0_i32_1 = arith.constant 0 : i32
    return %c0_i32, %c0_i32_0 : i32, i32
  }
  func.func @transform_2(%arg0: i32) -> (i32, i32) {
    %c0_i32 = arith.constant 0 : i32
    %c0_i32_0 = arith.constant 0 : i32
    %c0_i32_1 = arith.constant 0 : i32
    return %c0_i32, %c0_i32_0 : i32, i32
  }
  func.func @transform_3(%arg0: i32) -> (i32, i32) {
    %c0_i32 = arith.constant 0 : i32
    %c0_i32_0 = arith.constant 0 : i32
    return %arg0, %c0_i32 : i32, i32
  }
}

</mosaic_0001>

<bundles_post_ra>
// kernel: fc_block_eval.1
= control target key start
LH: loop header
LB: loop body
LE: loop exit
PB: predicated region body
PF: predicated region fallthrough
CT: control target
= control target key end

     0   :  { %8 = vsyncpa [#allocation3], 0  ;;  %s3565_s0 = inlined_call_operand.hbm [shape: f32[8,1024], index: 0, kind: input, shape index: {}]   ;;  %s3566_s1 = inlined_call_operand.hbm [shape: bf16[1024,512], index: 1, kind: input, shape index: {}]   ;;  %s3567_s2 = inlined_call_operand.hbm [shape: f32[1,512], index: 2, kind: input, shape index: {}]   ;;  %s3568_s3 = inlined_call_operand.hbm [shape: f32[8,512], index: 3, kind: output, shape index: {}]  }
   0x1   :  { %9 = vsyncpa [#allocation6], 0  ;;  %s26_s14 = sshll.u32 %s3566_s1, 4  ;;  %s27_s14 = int_to_ptr.hbm [resolvable:$true] %s26_s14 }
   0x2   :  { %10 = vsyncpa [#allocation4], 0  ;;  %s3458_s15 = smov [#allocation5]   ;;  %s16_s19 = sshll.u32 %s3565_s0, 4  ;;  %s17_s19 = int_to_ptr.hbm [resolvable:$true] %s16_s19 }
   0x3   :  { %s28_s16 = sshll.u32 %s3458_s15, 4  ;;  %s3459_s20 = smov 256   ;;  %s29_s16 = int_to_ptr.vmem [resolvable:$true] %s28_s16 }
   0x4   :  { %s3460_s21 = smov 16   ;;  %s3461_s22 = smov [#allocation2]  }
   0x5   :  { %34 = dma.hbm_to_vmem [thread:$0]  %s27_s14, 32768, %s29_s16, [#allocation6], %s3459_s20, %s3459_s20, %s3460_s21  }
   0x6   :  { %s18_s23 = sshll.u32 %s3461_s22, 4  ;;  %s40_s26 = sshll.u32 %s3567_s2, 4  ;;  %s19_s23 = int_to_ptr.vmem [resolvable:$true] %s18_s23  ;;  %s41_s26 = int_to_ptr.hbm [resolvable:$true] %s40_s26 }
   0x7   :  { %21 = dma.hbm_to_vmem [thread:$0]  %s17_s19, 1024, %s19_s23, [#allocation3]  }
   0x8   :  { %s3462_s1 = smov [#allocation7]  }
   0x9   :  { %s42_s27 = sshll.u32 %s3462_s1, 4  ;;  %s43_s27 = int_to_ptr.vmem [resolvable:$true] %s42_s27 }
   0xa   :  { %45 = dma.hbm_to_vmem [thread:$0]  %s41_s26, 64, %s43_s27, [#allocation6]  }
   0xb   :  { %3452 = dma.done.wait [#allocation3], 1024  }
   0xc   :  { %3453 = vsyncadd [#allocation3], 4294966272 }
   0xd   :  { %3454 = dma.done.wait [#allocation6], 32832  }
   0xe   :  { %3455 = vsyncadd [#allocation6], 4294934464  ;;  %v2184_v0 = vld [vmem:[#allocation5 + $0xe0] sm:$0xf]  ;;  %v3124_v1 = vld [vmem:[#allocation5 + $0xec] sm:$0xf0] }
   0xf   :  { %v2312_v2 = vld [vmem:[#allocation5 + $0x1e0] sm:$0xf]  ;;  %v2185_v3 = vor.u32 %v3124_v1, %v2184_v0  ;;  %v3156_v4 = vld [vmem:[#allocation5 + $0x1ec] sm:$0xf0]  ;;  %s3463_s0 = smov [#allocation8]   ;;  %s2059_s30 = sshll.u32 %s3568_s3, 4  ;;  %s2060_s30 = int_to_ptr.hbm [resolvable:$true] %s2059_s30 }
  0x10   :  { %v2440_v5 = vld [vmem:[#allocation5 + $0x2e0] sm:$0xf]  ;;  %v3188_v6 = vld [vmem:[#allocation5 + $0x2ec] sm:$0xf0]  ;;  %v2313_v7 = vor.u32 %v3156_v4, %v2312_v2  ;;  %s2057_s2 = sshll.u32 %s3463_s0, 4  ;;  %s2058_s2 = int_to_ptr.vmem [resolvable:$true] %s2057_s2 }
  0x11   :  { %v2441_v8 = vor.u32 %v3188_v6, %v2440_v5  ;;  %v2568_v9 = vld [vmem:[#allocation5 + $0x3e0] sm:$0xf]  ;;  %v3220_v10 = vld [vmem:[#allocation5 + $0x3ec] sm:$0xf0]  ;;  %1620 = vmatpush.bf16.msra.mxu0 %v2185_v3 }
  0x12   :  { %v2168_v11 = vld [vmem:[#allocation5 + $0xc0] sm:$0xf]  ;;  %v2569_v12 = vor.u32 %v3220_v10, %v2568_v9  ;;  %v3120_v13 = vld [vmem:[#allocation5 + $0xcc] sm:$0xf0]  ;;  %1633 = vmatpush.bf16.msra.mxu1 %v2313_v7 }
  0x13   :  { %v2296_v14 = vld [vmem:[#allocation5 + $0x1c0] sm:$0xf]  ;;  %v3152_v15 = vld [vmem:[#allocation5 + $0x1cc] sm:$0xf0]  ;;  %1646 = vmatpush.bf16.msra.mxu2 %v2441_v8  ;;  %v2169_v16 = vor.u32 %v3120_v13, %v2168_v11 }
  0x14   :  { %v2297_v17 = vor.u32 %v3152_v15, %v2296_v14  ;;  %v2424_v18 = vld [vmem:[#allocation5 + $0x2c0] sm:$0xf]  ;;  %v3184_v19 = vld [vmem:[#allocation5 + $0x2cc] sm:$0xf0]  ;;  %1659 = vmatpush.bf16.msra.mxu3 %v2569_v12 }
  0x15   :  { %v2552_v20 = vld [vmem:[#allocation5 + $0x3c0] sm:$0xf]  ;;  %v2425_v21 = vor.u32 %v3184_v19, %v2424_v18  ;;  %v3216_v22 = vld [vmem:[#allocation5 + $0x3cc] sm:$0xf0]  ;;  %1621 = vmatpush.bf16.msra.mxu0 %v2169_v16 }
  0x16   :  { %v2152_v23 = vld [vmem:[#allocation5 + $0xa0] sm:$0xf]  ;;  %v3116_v24 = vld [vmem:[#allocation5 + $0xac] sm:$0xf0]  ;;  %v2553_v25 = vor.u32 %v3216_v22, %v2552_v20  ;;  %1634 = vmatpush.bf16.msra.mxu1 %v2297_v17 }
  0x17   :  { %v2280_v26 = vld [vmem:[#allocation5 + $0x1a0] sm:$0xf]  ;;  %v3148_v27 = vld [vmem:[#allocation5 + $0x1ac] sm:$0xf0]  ;;  %v2153_v29 = vor.u32 %v3116_v24, %v2152_v23  ;;  %1647 = vmatpush.bf16.msra.mxu2 %v2425_v21 }
  0x18   :  { %v2408_v28 = vld [vmem:[#allocation5 + $0x2a0] sm:$0xf]  ;;  %v3180_v30 = vld [vmem:[#allocation5 + $0x2ac] sm:$0xf0]  ;;  %v2281_v33 = vor.u32 %v3148_v27, %v2280_v26  ;;  %1660 = vmatpush.bf16.msra.mxu3 %v2553_v25 }
  0x19   :  { %v2536_v31 = vld [vmem:[#allocation5 + $0x3a0] sm:$0xf]  ;;  %v3212_v32 = vld [vmem:[#allocation5 + $0x3ac] sm:$0xf0]  ;;  %v2409_v34 = vor.u32 %v3180_v30, %v2408_v28  ;;  %1622 = vmatpush.bf16.msra.mxu0 %v2153_v29 }
  0x1a   :  { %v2136_v35 = vld [vmem:[#allocation5 + $0x80] sm:$0xf]  ;;  %v3112_v36 = vld [vmem:[#allocation5 + $0x8c] sm:$0xf0]  ;;  %v2537_v38 = vor.u32 %v3212_v32, %v2536_v31  ;;  %1635 = vmatpush.bf16.msra.mxu1 %v2281_v33 }
  0x1b   :  { %v2264_v37 = vld [vmem:[#allocation5 + $0x180] sm:$0xf]  ;;  %v3144_v39 = vld [vmem:[#allocation5 + $0x18c] sm:$0xf0]  ;;  %v2137_v44 = vor.u32 %v3112_v36, %v2136_v35  ;;  %1648 = vmatpush.bf16.msra.mxu2 %v2409_v34 }
  0x1c   :  { %v2392_v40 = vld [vmem:[#allocation5 + $0x280] sm:$0xf]  ;;  %v3176_v41 = vld [vmem:[#allocation5 + $0x28c] sm:$0xf0]  ;;  %v2265_v45 = vor.u32 %v3144_v39, %v2264_v37  ;;  %1661 = vmatpush.bf16.msra.mxu3 %v2537_v38 }
  0x1d   :  { %v2520_v42 = vld [vmem:[#allocation5 + $0x380] sm:$0xf]  ;;  %v3208_v43 = vld [vmem:[#allocation5 + $0x38c] sm:$0xf0]  ;;  %v2393_v46 = vor.u32 %v3176_v41, %v2392_v40  ;;  %1623 = vmatpush.bf16.msra.mxu0 %v2137_v44 }
  0x1e   :  { %v2120_v47 = vld [vmem:[#allocation5 + $0x60] sm:$0xf]  ;;  %v3108_v48 = vld [vmem:[#allocation5 + $0x6c] sm:$0xf0]  ;;  %v2521_v50 = vor.u32 %v3208_v43, %v2520_v42  ;;  %1636 = vmatpush.bf16.msra.mxu1 %v2265_v45 }
  0x1f   :  { %v2248_v49 = vld [vmem:[#allocation5 + $0x160] sm:$0xf]  ;;  %v3140_v51 = vld [vmem:[#allocation5 + $0x16c] sm:$0xf0]  ;;  %v2121_v56 = vor.u32 %v3108_v48, %v2120_v47  ;;  %1649 = vmatpush.bf16.msra.mxu2 %v2393_v46 }
  0x20   :  { %v2376_v52 = vld [vmem:[#allocation5 + $0x260] sm:$0xf]  ;;  %v3172_v53 = vld [vmem:[#allocation5 + $0x26c] sm:$0xf0]  ;;  %v2249_v57 = vor.u32 %v3140_v51, %v2248_v49  ;;  %1662 = vmatpush.bf16.msra.mxu3 %v2521_v50 }
  0x21   :  { %v2504_v54 = vld [vmem:[#allocation5 + $0x360] sm:$0xf]  ;;  %v3204_v55 = vld [vmem:[#allocation5 + $0x36c] sm:$0xf0]  ;;  %v2377_v58 = vor.u32 %v3172_v53, %v2376_v52  ;;  %1624 = vmatpush.bf16.msra.mxu0 %v2121_v56 }
  0x22   :  { %v2104_v59 = vld [vmem:[#allocation5 + $0x40] sm:$0xf]  ;;  %v3104_v60 = vld [vmem:[#allocation5 + $0x4c] sm:$0xf0]  ;;  %v2505_v62 = vor.u32 %v3204_v55, %v2504_v54  ;;  %1637 = vmatpush.bf16.msra.mxu1 %v2249_v57 }
  0x23   :  { %v2232_v61 = vld [vmem:[#allocation5 + $0x140] sm:$0xf]  ;;  %v3136_v63 = vld [vmem:[#allocation5 + $0x14c] sm:$0xf0]  ;;  %v2105_v4 = vor.u32 %v3104_v60, %v2104_v59  ;;  %1650 = vmatpush.bf16.msra.mxu2 %v2377_v58 }
  0x24   :  { %v2360_v0 = vld [vmem:[#allocation5 + $0x240] sm:$0xf]  ;;  %v3168_v1 = vld [vmem:[#allocation5 + $0x24c] sm:$0xf0]  ;;  %v2233_v5 = vor.u32 %v3136_v63, %v2232_v61  ;;  %1663 = vmatpush.bf16.msra.mxu3 %v2505_v62 }
  0x25   :  { %v2488_v2 = vld [vmem:[#allocation5 + $0x340] sm:$0xf]  ;;  %v3200_v3 = vld [vmem:[#allocation5 + $0x34c] sm:$0xf0]  ;;  %v2361_v6 = vor.u32 %v3168_v1, %v2360_v0  ;;  %1625 = vmatpush.bf16.msra.mxu0 %v2105_v4  ;;  %v61_v1 = vld [vmem:[#allocation2 + $0x18] sm:$0xff] }
  0x26   :  { %v2088_v7 = vld [vmem:[#allocation5 + $0x20] sm:$0xf]  ;;  %v3100_v8 = vld [vmem:[#allocation5 + $0x2c] sm:$0xf0]  ;;  %v2489_v10 = vor.u32 %v3200_v3, %v2488_v2  ;;  %1638 = vmatpush.bf16.msra.mxu1 %v2233_v5  ;;  %v3497_v5 = vpack.c.bf16 %v61_v1, %v61_v1 }
  0x27   :  { %v2216_v9 = vld [vmem:[#allocation5 + $0x120] sm:$0xf]  ;;  %v3132_v11 = vld [vmem:[#allocation5 + $0x12c] sm:$0xf0]  ;;  %v2089_v16 = vor.u32 %v3100_v8, %v2088_v7  ;;  %1651 = vmatpush.bf16.msra.mxu2 %v2361_v6 }
  0x28   :  { %v2344_v12 = vld [vmem:[#allocation5 + $0x220] sm:$0xf]  ;;  %v3164_v13 = vld [vmem:[#allocation5 + $0x22c] sm:$0xf0]  ;;  %v2217_v19 = vor.u32 %v3132_v11, %v2216_v9  ;;  %1664 = vmatpush.bf16.msra.mxu3 %v2489_v10 }
  0x29   :  { %v2472_v14 = vld [vmem:[#allocation5 + $0x320] sm:$0xf]  ;;  %v3196_v15 = vld [vmem:[#allocation5 + $0x32c] sm:$0xf0]  ;;  %v2345_v20 = vor.u32 %v3164_v13, %v2344_v12  ;;  %1626 = vmatpush.bf16.msra.mxu0 %v2089_v16  ;;  %v59_v12 = vld [vmem:[#allocation2 + $0x8] sm:$0xff] }
  0x2a   :  { %v2072_v17 = vld [vmem:[#allocation5] sm:$0xf]  ;;  %v3096_v18 = vld [vmem:[#allocation5 + $0xc] sm:$0xf0]  ;;  %v2473_v24 = vor.u32 %v3196_v15, %v2472_v14  ;;  %1639 = vmatpush.bf16.msra.mxu1 %v2217_v19 }
  0x2b   :  { %v2200_v21 = vld [vmem:[#allocation5 + $0x100] sm:$0xf]  ;;  %v3128_v22 = vld [vmem:[#allocation5 + $0x10c] sm:$0xf0]  ;;  %v2073_v31 = vor.u32 %v3096_v18, %v2072_v17  ;;  %1652 = vmatpush.bf16.msra.mxu2 %v2345_v20  ;;  %v3501_v17 = vpack.c.bf16 %v59_v12, %v59_v12  ;;  %v3186_v12 = vld [vmem:[#allocation5 + $0x2e4] sm:$0xf] }
  0x2c   :  { %v2328_v23 = vld [vmem:[#allocation5 + $0x200] sm:$0xf]  ;;  %v3160_v25 = vld [vmem:[#allocation5 + $0x20c] sm:$0xf0]  ;;  %v2201_v35 = vor.u32 %v3128_v22, %v2200_v21  ;;  %1665 = vmatpush.bf16.msra.mxu3 %v2473_v24 }
  0x2d   :  { %v2456_v26 = vld [vmem:[#allocation5 + $0x300] sm:$0xf]  ;;  %v3192_v27 = vld [vmem:[#allocation5 + $0x30c] sm:$0xf0]  ;;  %v2329_v36 = vor.u32 %v3160_v25, %v2328_v23  ;;  %1627 = vmatpush.bf16.msra.mxu0 %v2073_v31 }
  0x2e   :  { %v2696_v28 = vld [vmem:[#allocation5 + $0x4e0] sm:$0xf]  ;;  %v3252_v29 = vld [vmem:[#allocation5 + $0x4ec] sm:$0xf0]  ;;  %v2457_v39 = vor.u32 %v3192_v27, %v2456_v26  ;;  %1640 = vmatpush.bf16.msra.mxu1 %v2201_v35 }
  0x2f   :  { %v2824_v30 = vld [vmem:[#allocation5 + $0x5e0] sm:$0xf]  ;;  %v3284_v32 = vld [vmem:[#allocation5 + $0x5ec] sm:$0xf0]  ;;  %v2697_v40 = vor.u32 %v3252_v29, %v2696_v28  ;;  %1653 = vmatpush.bf16.msra.mxu2 %v2329_v36 }
  0x30   :  { %v2952_v33 = vld [vmem:[#allocation5 + $0x6e0] sm:$0xf]  ;;  %v3316_v34 = vld [vmem:[#allocation5 + $0x6ec] sm:$0xf0]  ;;  %v2825_v41 = vor.u32 %v3284_v32, %v2824_v30  ;;  %1666 = vmatpush.bf16.msra.mxu3 %v2457_v39 }
  0x31   :  { %v3080_v37 = vld [vmem:[#allocation5 + $0x7e0] sm:$0xf]  ;;  %v3348_v38 = vld [vmem:[#allocation5 + $0x7ec] sm:$0xf0]  ;;  %v2953_v42 = vor.u32 %v3316_v34, %v2952_v33  ;;  %1672 = vmatpush.bf16.msrb.mxu0 %v2697_v40  ;;  %1641 = vmatmul.bf16.vlgmr.msra.gmra.mxu1 %v3501_v17 }
  0x32   :  { %v2680_v43 = vld [vmem:[#allocation5 + $0x4c0] sm:$0xf]  ;;  %v3248_v44 = vld [vmem:[#allocation5 + $0x4cc] sm:$0xf0]  ;;  %v3081_v46 = vor.u32 %v3348_v38, %v3080_v37  ;;  %1685 = vmatpush.bf16.msrb.mxu1 %v2825_v41 }
  0x33   :  { %v2808_v45 = vld [vmem:[#allocation5 + $0x5c0] sm:$0xf]  ;;  %v3280_v47 = vld [vmem:[#allocation5 + $0x5cc] sm:$0xf0]  ;;  %v2681_v52 = vor.u32 %v3248_v44, %v2680_v43  ;;  %1698 = vmatpush.bf16.msrb.mxu2 %v2953_v42  ;;  %1667 = vmatmul.bf16.vlgmr.msra.gmra.mxu3 %v3497_v5 }
  0x34   :  { %v2936_v48 = vld [vmem:[#allocation5 + $0x6c0] sm:$0xf]  ;;  %v3312_v49 = vld [vmem:[#allocation5 + $0x6cc] sm:$0xf0]  ;;  %v2809_v56 = vor.u32 %v3280_v47, %v2808_v45  ;;  %1711 = vmatpush.bf16.msrb.mxu3 %v3081_v46 }
  0x35   :  { %v3064_v50 = vld [vmem:[#allocation5 + $0x7c0] sm:$0xf]  ;;  %v3344_v51 = vld [vmem:[#allocation5 + $0x7cc] sm:$0xf0]  ;;  %v2937_v57 = vor.u32 %v3312_v49, %v2936_v48  ;;  %1673 = vmatpush.bf16.msrb.mxu0 %v2681_v52 }
  0x36   :  { %v2664_v53 = vld [vmem:[#allocation5 + $0x4a0] sm:$0xf]  ;;  %v3244_v54 = vld [vmem:[#allocation5 + $0x4ac] sm:$0xf0]  ;;  %v3065_v61 = vor.u32 %v3344_v51, %v3064_v50  ;;  %1686 = vmatpush.bf16.msrb.mxu1 %v2809_v56 }
  0x37   :  { %v2792_v55 = vld [vmem:[#allocation5 + $0x5a0] sm:$0xf]  ;;  %v3276_v58 = vld [vmem:[#allocation5 + $0x5ac] sm:$0xf0]  ;;  %v2665_v6 = vor.u32 %v3244_v54, %v2664_v53  ;;  %1699 = vmatpush.bf16.msrb.mxu2 %v2937_v57 }
  0x38   :  { %v2920_v59 = vld [vmem:[#allocation5 + $0x6a0] sm:$0xf]  ;;  %v60_v60 = vld [vmem:[#allocation2 + $0x10] sm:$0xff]  ;;  %v2793_v8 = vor.u32 %v3276_v58, %v2792_v55  ;;  %1712 = vmatpush.bf16.msrb.mxu3 %v3065_v61 }
  0x39   :  { %v3308_v62 = vld [vmem:[#allocation5 + $0x6ac] sm:$0xf0]  ;;  %v3493_v63 = vpack.c.bf16 %v60_v60, %v60_v60  ;;  %v58_v0 = vld [vmem:[#allocation2] sm:$0xff]  ;;  %1674 = vmatpush.bf16.msrb.mxu0 %v2665_v6 }
  0x3a   :  { %v3048_v2 = vld [vmem:[#allocation5 + $0x7a0] sm:$0xf]  ;;  %v3340_v3 = vld [vmem:[#allocation5 + $0x7ac] sm:$0xf0]  ;;  %v3495_v4 = vpack.c.bf16 %v58_v0, %v58_v0  ;;  %v2921_v9 = vor.u32 %v3308_v62, %v2920_v59  ;;  %1687 = vmatpush.bf16.msrb.mxu1 %v2793_v8  ;;  %v2186_v8 = vld [vmem:[#allocation5 + $0xf0] sm:$0xf0] }
  0x3b   :  { %v2648_v7 = vld [vmem:[#allocation5 + $0x480] sm:$0xf]  ;;  %1654 = vmatmul.bf16.vlgmr.msra.gmra.mxu2 %v3493_v63  ;;  %v3240_v10 = vld [vmem:[#allocation5 + $0x48c] sm:$0xf0]  ;;  %v3049_v13 = vor.u32 %v3340_v3, %v3048_v2 }
  0x3c   :  { %v2776_v11 = vld [vmem:[#allocation5 + $0x580] sm:$0xf]  ;;  %v3272_v14 = vld [vmem:[#allocation5 + $0x58c] sm:$0xf0]  ;;  %1628 = vmatmul.bf16.vlgmr.msra.gmra.mxu0 %v3495_v4  ;;  %v2649_v20 = vor.u32 %v3240_v10, %v2648_v7  ;;  %1700 = vmatpush.bf16.msrb.mxu2 %v2921_v9  ;;  %v3122_v7 = vld [vmem:[#allocation5 + $0xe4] sm:$0xf] }
  0x3d   :  { %v2904_v15 = vld [vmem:[#allocation5 + $0x680] sm:$0xf]  ;;  %v3304_v16 = vld [vmem:[#allocation5 + $0x68c] sm:$0xf0]  ;;  %v2777_v21 = vor.u32 %v3272_v14, %v2776_v11  ;;  %1713 = vmatpush.bf16.msrb.mxu3 %v3049_v13  ;;  %v3154_v9 = vld [vmem:[#allocation5 + $0x1e4] sm:$0xf] }
  0x3e   :  { %v3032_v18 = vld [vmem:[#allocation5 + $0x780] sm:$0xf]  ;;  %v3336_v19 = vld [vmem:[#allocation5 + $0x78c] sm:$0xf0]  ;;  %v2905_v22 = vor.u32 %v3304_v16, %v2904_v15  ;;  %1675 = vmatpush.bf16.msrb.mxu0 %v2649_v20  ;;  %v2314_v11 = vld [vmem:[#allocation5 + $0x1f0] sm:$0xf0] }
  0x3f   :  { %v2632_v23 = vld [vmem:[#allocation5 + $0x460] sm:$0xf]  ;;  %v3236_v24 = vld [vmem:[#allocation5 + $0x46c] sm:$0xf0]  ;;  %v3033_v26 = vor.u32 %v3336_v19, %v3032_v18  ;;  %1688 = vmatpush.bf16.msrb.mxu1 %v2777_v21  ;;  %v2442_v13 = vld [vmem:[#allocation5 + $0x2f0] sm:$0xf0]  ;;  %v2189_v21 = vor.u32 %v3122_v7, %v2186_v8 }
  0x40   :  { %v2760_v25 = vld [vmem:[#allocation5 + $0x560] sm:$0xf]  ;;  %v3268_v27 = vld [vmem:[#allocation5 + $0x56c] sm:$0xf0]  ;;  %v2633_v32 = vor.u32 %v3236_v24, %v2632_v23  ;;  %1701 = vmatpush.bf16.msrb.mxu2 %v2905_v22  ;;  %v3218_v16 = vld [vmem:[#allocation5 + $0x3e4] sm:$0xf] }
  0x41   :  { %v2888_v28 = vld [vmem:[#allocation5 + $0x660] sm:$0xf]  ;;  %v3300_v29 = vld [vmem:[#allocation5 + $0x66c] sm:$0xf0]  ;;  %v2761_v33 = vor.u32 %v3268_v27, %v2760_v25  ;;  %1714 = vmatpush.bf16.msrb.mxu3 %v3033_v26  ;;  %v2570_v18 = vld [vmem:[#allocation5 + $0x3f0] sm:$0xf0]  ;;  %v2317_v25 = vor.u32 %v3154_v9, %v2314_v11  ;;  %v2445_v26 = vor.u32 %v3186_v12, %v2442_v13 }
  0x42   :  { %v3016_v30 = vld [vmem:[#allocation5 + $0x760] sm:$0xf]  ;;  %v3332_v31 = vld [vmem:[#allocation5 + $0x76c] sm:$0xf0]  ;;  %v2889_v34 = vor.u32 %v3300_v29, %v2888_v28  ;;  %1676 = vmatpush.bf16.msrb.mxu0 %v2633_v32  ;;  %v3118_v22 = vld [vmem:[#allocation5 + $0xc4] sm:$0xf] }
  0x43   :  { %v2616_v35 = vld [vmem:[#allocation5 + $0x440] sm:$0xf]  ;;  %v3232_v36 = vld [vmem:[#allocation5 + $0x44c] sm:$0xf0]  ;;  %v3017_v38 = vor.u32 %v3332_v31, %v3016_v30  ;;  %1689 = vmatpush.bf16.msrb.mxu1 %v2761_v33  ;;  %v65_v24 = vld [vmem:[#allocation2 + $0x38] sm:$0xff]  ;;  %v2573_v30 = vor.u32 %v3218_v16, %v2570_v18 }
  0x44   :  { %v2744_v37 = vld [vmem:[#allocation5 + $0x540] sm:$0xf]  ;;  %v3264_v39 = vld [vmem:[#allocation5 + $0x54c] sm:$0xf0]  ;;  %v2617_v44 = vor.u32 %v3232_v36, %v2616_v35  ;;  %1702 = vmatpush.bf16.msrb.mxu2 %v2889_v34  ;;  %v2170_v27 = vld [vmem:[#allocation5 + $0xd0] sm:$0xf0] }
  0x45   :  { %v2872_v40 = vld [vmem:[#allocation5 + $0x640] sm:$0xf]  ;;  %v3296_v41 = vld [vmem:[#allocation5 + $0x64c] sm:$0xf0]  ;;  %v2745_v45 = vor.u32 %v3264_v39, %v2744_v37  ;;  %1715 = vmatpush.bf16.msrb.mxu3 %v3017_v38  ;;  %v3150_v28 = vld [vmem:[#allocation5 + $0x1c4] sm:$0xf]  ;;  %v3509_v38 = vpack.c.bf16 %v65_v24, %v65_v24  ;;  %v2173_v39 = vor.u32 %v3118_v22, %v2170_v27 }
  0x46   :  { %v3000_v42 = vld [vmem:[#allocation5 + $0x740] sm:$0xf]  ;;  %v3328_v43 = vld [vmem:[#allocation5 + $0x74c] sm:$0xf0]  ;;  %v2873_v46 = vor.u32 %v3296_v41, %v2872_v40  ;;  %1677 = vmatpush.bf16.msrb.mxu0 %v2617_v44  ;;  %v63_v29 = vld [vmem:[#allocation2 + $0x28] sm:$0xff] }
  0x47   :  { %v2600_v47 = vld [vmem:[#allocation5 + $0x420] sm:$0xf]  ;;  %v3228_v48 = vld [vmem:[#allocation5 + $0x42c] sm:$0xf0]  ;;  %v3001_v50 = vor.u32 %v3328_v43, %v3000_v42  ;;  %1690 = vmatpush.bf16.msrb.mxu1 %v2745_v45  ;;  %v2298_v31 = vld [vmem:[#allocation5 + $0x1d0] sm:$0xf0]  ;;  %v3511_v40 = vpack.c.bf16 %v63_v29, %v63_v29 }
  0x48   :  { %v2728_v49 = vld [vmem:[#allocation5 + $0x520] sm:$0xf]  ;;  %v3260_v51 = vld [vmem:[#allocation5 + $0x52c] sm:$0xf0]  ;;  %v2601_v56 = vor.u32 %v3228_v48, %v2600_v47  ;;  %1703 = vmatpush.bf16.msrb.mxu2 %v2873_v46  ;;  %v3182_v32 = vld [vmem:[#allocation5 + $0x2c4] sm:$0xf]  ;;  %v2301_v41 = vor.u32 %v3150_v28, %v2298_v31 }
  0x49   :  { %v2856_v52 = vld [vmem:[#allocation5 + $0x620] sm:$0xf]  ;;  %v3292_v53 = vld [vmem:[#allocation5 + $0x62c] sm:$0xf0]  ;;  %v2729_v59 = vor.u32 %v3260_v51, %v2728_v49  ;;  %1716 = vmatpush.bf16.msrb.mxu3 %v3001_v50  ;;  %v2426_v33 = vld [vmem:[#allocation5 + $0x2d0] sm:$0xf0] }
  0x4a   :  { %v2984_v54 = vld [vmem:[#allocation5 + $0x720] sm:$0xf]  ;;  %v3324_v55 = vld [vmem:[#allocation5 + $0x72c] sm:$0xf0]  ;;  %v2857_v60 = vor.u32 %v3292_v53, %v2856_v52  ;;  %1678 = vmatpush.bf16.msrb.mxu0 %v2601_v56  ;;  %v3214_v35 = vld [vmem:[#allocation5 + $0x3c4] sm:$0xf]  ;;  %v2429_v42 = vor.u32 %v3182_v32, %v2426_v33 }
  0x4b   :  { %v2584_v57 = vld [vmem:[#allocation5 + $0x400] sm:$0xf]  ;;  %v3224_v58 = vld [vmem:[#allocation5 + $0x40c] sm:$0xf0]  ;;  %v2985_v1 = vor.u32 %v3324_v55, %v2984_v54  ;;  %1691 = vmatpush.bf16.msrb.mxu1 %v2729_v59  ;;  %v2554_v36 = vld [vmem:[#allocation5 + $0x3d0] sm:$0xf0] }
  0x4c   :  { %v2712_v61 = vld [vmem:[#allocation5 + $0x500] sm:$0xf]  ;;  %v3256_v62 = vld [vmem:[#allocation5 + $0x50c] sm:$0xf0]  ;;  %v2585_v10 = vor.u32 %v3224_v58, %v2584_v57  ;;  %1704 = vmatpush.bf16.msrb.mxu2 %v2857_v60  ;;  %v3114_v43 = vld [vmem:[#allocation5 + $0xa4] sm:$0xf]  ;;  %v2557_v46 = vor.u32 %v3214_v35, %v2554_v36 }
  0x4d   :  { %v2840_v0 = vld [vmem:[#allocation5 + $0x600] sm:$0xf]  ;;  %v3288_v2 = vld [vmem:[#allocation5 + $0x60c] sm:$0xf0]  ;;  %v2713_v14 = vor.u32 %v3256_v62, %v2712_v61  ;;  %1717 = vmatpush.bf16.msrb.mxu3 %v2985_v1  ;;  %v2154_v44 = vld [vmem:[#allocation5 + $0xb0] sm:$0xf0] }
  0x4e   :  { %v2968_v3 = vld [vmem:[#allocation5 + $0x700] sm:$0xf]  ;;  %v3320_v6 = vld [vmem:[#allocation5 + $0x70c] sm:$0xf0]  ;;  %v2841_v15 = vor.u32 %v3288_v2, %v2840_v0  ;;  %1679 = vmatpush.bf16.msrb.mxu0 %v2585_v10  ;;  %v3146_v45 = vld [vmem:[#allocation5 + $0x1a4] sm:$0xf]  ;;  %v2157_v52 = vor.u32 %v3114_v43, %v2154_v44 }
  0x4f   :  { %v64_v19 = vld [vmem:[#allocation2 + $0x30] sm:$0xff]  ;;  %v2969_v20 = vor.u32 %v3320_v6, %v2968_v3  ;;  %v62_v23 = vld [vmem:[#allocation2 + $0x20] sm:$0xff]  ;;  %1692 = vmatpush.bf16.msrb.mxu1 %v2713_v14 }
  0x50   :  { %v3505_v34 = vpack.c.bf16 %v64_v19, %v64_v19  ;;  %1705 = vmatpush.bf16.msrb.mxu2 %v2841_v15  ;;  %v3507_v37 = vpack.c.bf16 %v62_v23, %v62_v23  ;;  %v2282_v47 = vld [vmem:[#allocation5 + $0x1b0] sm:$0xf0]  ;;  %v3178_v48 = vld [vmem:[#allocation5 + $0x2a4] sm:$0xf] }
  0x51   :  { %1718 = vmatpush.bf16.msrb.mxu3 %v2969_v20  ;;  %v2410_v49 = vld [vmem:[#allocation5 + $0x2b0] sm:$0xf0]  ;;  %v3210_v50 = vld [vmem:[#allocation5 + $0x3a4] sm:$0xf]  ;;  %v2285_v53 = vor.u32 %v3146_v45, %v2282_v47 }
  0x52   :  { %1724 = vmatpush.bf16.msra.mxu0 %v2189_v21  ;;  %v2538_v51 = vld [vmem:[#allocation5 + $0x3b0] sm:$0xf0]  ;;  %1693 = vmatmul.bf16.vlgmr.msrb.gmra.mxu1 %v3511_v40  ;;  %v2413_v54 = vor.u32 %v3178_v48, %v2410_v49  ;;  %v3110_v55 = vld [vmem:[#allocation5 + $0x84] sm:$0xf] }
  0x53   :  { %1737 = vmatpush.bf16.msra.mxu1 %v2317_v25  ;;  %1706 = vmatmul.bf16.vlgmr.msrb.gmra.mxu2 %v3505_v34  ;;  %v2138_v56 = vld [vmem:[#allocation5 + $0x90] sm:$0xf0]  ;;  %v3142_v57 = vld [vmem:[#allocation5 + $0x184] sm:$0xf]  ;;  %v2541_v58 = vor.u32 %v3210_v50, %v2538_v51 }
  0x54   :  { %1750 = vmatpush.bf16.msra.mxu2 %v2445_v26  ;;  %1680 = vmatmul.bf16.vlgmr.msrb.gmra.mxu0 %v3507_v37  ;;  %v2266_v59 = vld [vmem:[#allocation5 + $0x190] sm:$0xf0]  ;;  %v3174_v60 = vld [vmem:[#allocation5 + $0x284] sm:$0xf]  ;;  %v2141_v1 = vor.u32 %v3110_v55, %v2138_v56 }
  0x55   :  { %1763 = vmatpush.bf16.msra.mxu3 %v2573_v30  ;;  %v2394_v61 = vld [vmem:[#allocation5 + $0x290] sm:$0xf0]  ;;  %v3206_v62 = vld [vmem:[#allocation5 + $0x384] sm:$0xf]  ;;  %v2269_v2 = vor.u32 %v3142_v57, %v2266_v59 }
  0x56   :  { %1719 = vmatmul.bf16.vlgmr.msrb.gmra.mxu3 %v3509_v38  ;;  %1725 = vmatpush.bf16.msra.mxu0 %v2173_v39  ;;  %v2522_v0 = vld [vmem:[#allocation5 + $0x390] sm:$0xf0]  ;;  %v2397_v3 = vor.u32 %v3174_v60, %v2394_v61  ;;  %v3106_v6 = vld [vmem:[#allocation5 + $0x64] sm:$0xf] }
  0x57   :  { %1738 = vmatpush.bf16.msra.mxu1 %v2301_v41  ;;  %v2122_v7 = vld [vmem:[#allocation5 + $0x70] sm:$0xf0]  ;;  %v3138_v8 = vld [vmem:[#allocation5 + $0x164] sm:$0xf]  ;;  %v2525_v9 = vor.u32 %v3206_v62, %v2522_v0 }
  0x58   :  { %1751 = vmatpush.bf16.msra.mxu2 %v2429_v42  ;;  %v2250_v10 = vld [vmem:[#allocation5 + $0x170] sm:$0xf0]  ;;  %v3170_v11 = vld [vmem:[#allocation5 + $0x264] sm:$0xf]  ;;  %v2125_v15 = vor.u32 %v3106_v6, %v2122_v7 }
  0x59   :  { %1764 = vmatpush.bf16.msra.mxu3 %v2557_v46  ;;  %v2378_v12 = vld [vmem:[#allocation5 + $0x270] sm:$0xf0]  ;;  %v3202_v13 = vld [vmem:[#allocation5 + $0x364] sm:$0xf]  ;;  %v2253_v16 = vor.u32 %v3138_v8, %v2250_v10 }
  0x5a   :  { %1726 = vmatpush.bf16.msra.mxu0 %v2157_v52  ;;  %v2506_v14 = vld [vmem:[#allocation5 + $0x370] sm:$0xf0]  ;;  %v2381_v18 = vor.u32 %v3170_v11, %v2378_v12  ;;  %v3102_v19 = vld [vmem:[#allocation5 + $0x44] sm:$0xf] }
  0x5b   :  { %1739 = vmatpush.bf16.msra.mxu1 %v2285_v53  ;;  %v2106_v20 = vld [vmem:[#allocation5 + $0x50] sm:$0xf0]  ;;  %v3134_v21 = vld [vmem:[#allocation5 + $0x144] sm:$0xf]  ;;  %v2509_v22 = vor.u32 %v3202_v13, %v2506_v14 }
  0x5c   :  { %1752 = vmatpush.bf16.msra.mxu2 %v2413_v54  ;;  %v2234_v23 = vld [vmem:[#allocation5 + $0x150] sm:$0xf0]  ;;  %v3166_v24 = vld [vmem:[#allocation5 + $0x244] sm:$0xf]  ;;  %v2109_v28 = vor.u32 %v3102_v19, %v2106_v20 }
  0x5d   :  { %1765 = vmatpush.bf16.msra.mxu3 %v2541_v58  ;;  %v2362_v25 = vld [vmem:[#allocation5 + $0x250] sm:$0xf0]  ;;  %v3198_v26 = vld [vmem:[#allocation5 + $0x344] sm:$0xf]  ;;  %v2237_v29 = vor.u32 %v3134_v21, %v2234_v23 }
  0x5e   :  { %1727 = vmatpush.bf16.msra.mxu0 %v2141_v1  ;;  %v2490_v27 = vld [vmem:[#allocation5 + $0x350] sm:$0xf0]  ;;  %v2365_v30 = vor.u32 %v3166_v24, %v2362_v25  ;;  %v3098_v31 = vld [vmem:[#allocation5 + $0x24] sm:$0xf] }
  0x5f   :  { %1740 = vmatpush.bf16.msra.mxu1 %v2269_v2  ;;  %v2090_v32 = vld [vmem:[#allocation5 + $0x30] sm:$0xf0]  ;;  %v3130_v33 = vld [vmem:[#allocation5 + $0x124] sm:$0xf]  ;;  %v2493_v35 = vor.u32 %v3198_v26, %v2490_v27 }
  0x60   :  { %1753 = vmatpush.bf16.msra.mxu2 %v2397_v3  ;;  %v2218_v36 = vld [vmem:[#allocation5 + $0x130] sm:$0xf0]  ;;  %v3162_v39 = vld [vmem:[#allocation5 + $0x224] sm:$0xf]  ;;  %v2093_v44 = vor.u32 %v3098_v31, %v2090_v32 }
  0x61   :  { %1766 = vmatpush.bf16.msra.mxu3 %v2525_v9  ;;  %v2346_v41 = vld [vmem:[#allocation5 + $0x230] sm:$0xf0]  ;;  %v3194_v42 = vld [vmem:[#allocation5 + $0x324] sm:$0xf]  ;;  %v2221_v47 = vor.u32 %v3130_v33, %v2218_v36 }
  0x62   :  { %1728 = vmatpush.bf16.msra.mxu0 %v2125_v15  ;;  %v2474_v43 = vld [vmem:[#allocation5 + $0x330] sm:$0xf0]  ;;  %v3094_v45 = vld [vmem:[#allocation5 + $0x4] sm:$0xf]  ;;  %v2349_v48 = vor.u32 %v3162_v39, %v2346_v41 }
  0x63   :  { %1741 = vmatpush.bf16.msra.mxu1 %v2253_v16  ;;  %v2074_v46 = vld [vmem:[#allocation5 + $0x10] sm:$0xf0]  ;;  %v3126_v49 = vld [vmem:[#allocation5 + $0x104] sm:$0xf]  ;;  %v2477_v52 = vor.u32 %v3194_v42, %v2474_v43 }
  0x64   :  { %1754 = vmatpush.bf16.msra.mxu2 %v2381_v18  ;;  %v2202_v50 = vld [vmem:[#allocation5 + $0x110] sm:$0xf0]  ;;  %v3158_v51 = vld [vmem:[#allocation5 + $0x204] sm:$0xf]  ;;  %v2077_v59 = vor.u32 %v3094_v45, %v2074_v46 }
  0x65   :  { %1767 = vmatpush.bf16.msra.mxu3 %v2509_v22  ;;  %v2330_v53 = vld [vmem:[#allocation5 + $0x210] sm:$0xf0]  ;;  %v3190_v54 = vld [vmem:[#allocation5 + $0x304] sm:$0xf]  ;;  %v2205_v0 = vor.u32 %v3126_v49, %v2202_v50 }
  0x66   :  { %1729 = vmatpush.bf16.msra.mxu0 %v2109_v28  ;;  %v2458_v55 = vld [vmem:[#allocation5 + $0x310] sm:$0xf0]  ;;  %v3250_v56 = vld [vmem:[#allocation5 + $0x4e4] sm:$0xf]  ;;  %v2333_v1 = vor.u32 %v3158_v51, %v2330_v53 }
  0x67   :  { %1742 = vmatpush.bf16.msra.mxu1 %v2237_v29  ;;  %v2698_v57 = vld [vmem:[#allocation5 + $0x4f0] sm:$0xf0]  ;;  %v3282_v58 = vld [vmem:[#allocation5 + $0x5e4] sm:$0xf]  ;;  %v2461_v6 = vor.u32 %v3190_v54, %v2458_v55 }
  0x68   :  { %1755 = vmatpush.bf16.msra.mxu2 %v2365_v30  ;;  %v2826_v60 = vld [vmem:[#allocation5 + $0x5f0] sm:$0xf0]  ;;  %v3314_v61 = vld [vmem:[#allocation5 + $0x6e4] sm:$0xf]  ;;  %v2701_v7 = vor.u32 %v3250_v56, %v2698_v57 }
  0x69   :  { %1768 = vmatpush.bf16.msra.mxu3 %v2493_v35  ;;  %v2954_v62 = vld [vmem:[#allocation5 + $0x6f0] sm:$0xf0]  ;;  %v3346_v2 = vld [vmem:[#allocation5 + $0x7e4] sm:$0xf]  ;;  %v2829_v8 = vor.u32 %v3282_v58, %v2826_v60 }
  0x6a   :  { %1730 = vmatpush.bf16.msra.mxu0 %v2093_v44  ;;  %v3082_v3 = vld [vmem:[#allocation5 + $0x7f0] sm:$0xf0]  ;;  %v2957_v9 = vor.u32 %v3314_v61, %v2954_v62  ;;  %v3246_v10 = vld [vmem:[#allocation5 + $0x4c4] sm:$0xf] }
  0x6b   :  { %1743 = vmatpush.bf16.msra.mxu1 %v2221_v47  ;;  %v2682_v11 = vld [vmem:[#allocation5 + $0x4d0] sm:$0xf0]  ;;  %v3278_v12 = vld [vmem:[#allocation5 + $0x5c4] sm:$0xf]  ;;  %v3085_v13 = vor.u32 %v3346_v2, %v3082_v3 }
  0x6c   :  { %1756 = vmatpush.bf16.msra.mxu2 %v2349_v48  ;;  %v2810_v14 = vld [vmem:[#allocation5 + $0x5d0] sm:$0xf0]  ;;  %v3310_v15 = vld [vmem:[#allocation5 + $0x6c4] sm:$0xf]  ;;  %v2685_v20 = vor.u32 %v3246_v10, %v2682_v11 }
  0x6d   :  { %1769 = vmatpush.bf16.msra.mxu3 %v2477_v52  ;;  %v2938_v16 = vld [vmem:[#allocation5 + $0x6d0] sm:$0xf0]  ;;  %v3342_v18 = vld [vmem:[#allocation5 + $0x7c4] sm:$0xf]  ;;  %v2813_v21 = vor.u32 %v3278_v12, %v2810_v14 }
  0x6e   :  { %1731 = vmatpush.bf16.msra.mxu0 %v2077_v59  ;;  %v3066_v19 = vld [vmem:[#allocation5 + $0x7d0] sm:$0xf0]  ;;  %v2941_v22 = vor.u32 %v3310_v15, %v2938_v16  ;;  %v3242_v23 = vld [vmem:[#allocation5 + $0x4a4] sm:$0xf] }
  0x6f   :  { %1744 = vmatpush.bf16.msra.mxu1 %v2205_v0  ;;  %v2666_v24 = vld [vmem:[#allocation5 + $0x4b0] sm:$0xf0]  ;;  %v3274_v25 = vld [vmem:[#allocation5 + $0x5a4] sm:$0xf]  ;;  %v3069_v26 = vor.u32 %v3342_v18, %v3066_v19 }
  0x70   :  { %1757 = vmatpush.bf16.msra.mxu2 %v2333_v1  ;;  %v2794_v27 = vld [vmem:[#allocation5 + $0x5b0] sm:$0xf0]  ;;  %v3306_v28 = vld [vmem:[#allocation5 + $0x6a4] sm:$0xf]  ;;  %v2669_v32 = vor.u32 %v3242_v23, %v2666_v24 }
  0x71   :  { %1770 = vmatpush.bf16.msra.mxu3 %v2461_v6  ;;  %v2922_v29 = vld [vmem:[#allocation5 + $0x6b0] sm:$0xf0]  ;;  %v3338_v30 = vld [vmem:[#allocation5 + $0x7a4] sm:$0xf]  ;;  %1732 = vmatmul.bf16.vlgmr.msra.gmra.mxu0 %v3495_v4  ;;  %v2797_v33 = vor.u32 %v3274_v25, %v2794_v27 }
  0x72   :  { %1776 = vmatpush.bf16.msrb.mxu0 %v2701_v7  ;;  %v3050_v31 = vld [vmem:[#allocation5 + $0x7b0] sm:$0xf0]  ;;  %1745 = vmatmul.bf16.vlgmr.msra.gmra.mxu1 %v3501_v17  ;;  %v2925_v35 = vor.u32 %v3306_v28, %v2922_v29  ;;  %v3238_v36 = vld [vmem:[#allocation5 + $0x484] sm:$0xf] }
  0x73   :  { %1789 = vmatpush.bf16.msrb.mxu1 %v2829_v8  ;;  %1758 = vmatmul.bf16.vlgmr.msra.gmra.mxu2 %v3493_v63  ;;  %v2650_v39 = vld [vmem:[#allocation5 + $0x490] sm:$0xf0]  ;;  %v3270_v41 = vld [vmem:[#allocation5 + $0x584] sm:$0xf]  ;;  %v3053_v42 = vor.u32 %v3338_v30, %v3050_v31 }
  0x74   :  { %1802 = vmatpush.bf16.msrb.mxu2 %v2957_v9  ;;  %1771 = vmatmul.bf16.vlgmr.msra.gmra.mxu3 %v3497_v5  ;;  %v2778_v43 = vld [vmem:[#allocation5 + $0x590] sm:$0xf0]  ;;  %v3302_v44 = vld [vmem:[#allocation5 + $0x684] sm:$0xf]  ;;  %v2653_v48 = vor.u32 %v3238_v36, %v2650_v39  ;;  %v2192_v39 = vld [vmem:[#allocation5 + $0xe8] sm:$0xf] }
  0x75   :  { %1815 = vmatpush.bf16.msrb.mxu3 %v3085_v13  ;;  %v2906_v45 = vld [vmem:[#allocation5 + $0x690] sm:$0xf0]  ;;  %v3334_v46 = vld [vmem:[#allocation5 + $0x784] sm:$0xf]  ;;  %v2781_v49 = vor.u32 %v3270_v41, %v2778_v43  ;;  %v3125_v41 = vld [vmem:[#allocation5 + $0xf4] sm:$0xf0] }
  0x76   :  { %1777 = vmatpush.bf16.msrb.mxu0 %v2685_v20  ;;  %v3034_v47 = vld [vmem:[#allocation5 + $0x790] sm:$0xf0]  ;;  %v2909_v50 = vor.u32 %v3302_v44, %v2906_v45  ;;  %v3234_v51 = vld [vmem:[#allocation5 + $0x464] sm:$0xf]  ;;  %v3157_v44 = vld [vmem:[#allocation5 + $0x1f4] sm:$0xf0] }
  0x77   :  { %1790 = vmatpush.bf16.msrb.mxu1 %v2813_v21  ;;  %v2634_v52 = vld [vmem:[#allocation5 + $0x470] sm:$0xf0]  ;;  %v3266_v53 = vld [vmem:[#allocation5 + $0x564] sm:$0xf]  ;;  %v3037_v54 = vor.u32 %v3334_v46, %v3034_v47  ;;  %v2448_v45 = vld [vmem:[#allocation5 + $0x2e8] sm:$0xf] }
  0x78   :  { %1803 = vmatpush.bf16.msrb.mxu2 %v2941_v22  ;;  %v2762_v55 = vld [vmem:[#allocation5 + $0x570] sm:$0xf0]  ;;  %v3298_v56 = vld [vmem:[#allocation5 + $0x664] sm:$0xf]  ;;  %v2637_v60 = vor.u32 %v3234_v51, %v2634_v52  ;;  %v3189_v46 = vld [vmem:[#allocation5 + $0x2f4] sm:$0xf0]  ;;  %v2193_v52 = vor.u32 %v3125_v41, %v2192_v39 }
  0x79   :  { %1816 = vmatpush.bf16.msrb.mxu3 %v3069_v26  ;;  %v2890_v57 = vld [vmem:[#allocation5 + $0x670] sm:$0xf0]  ;;  %v3330_v58 = vld [vmem:[#allocation5 + $0x764] sm:$0xf]  ;;  %v2765_v61 = vor.u32 %v3266_v53, %v2762_v55  ;;  %v2176_v55 = vld [vmem:[#allocation5 + $0xc8] sm:$0xf] }
  0x7a   :  { %1778 = vmatpush.bf16.msrb.mxu0 %v2669_v32  ;;  %v3018_v59 = vld [vmem:[#allocation5 + $0x770] sm:$0xf0]  ;;  %v2893_v62 = vor.u32 %v3298_v56, %v2890_v57  ;;  %v3230_v0 = vld [vmem:[#allocation5 + $0x444] sm:$0xf]  ;;  %v3121_v56 = vld [vmem:[#allocation5 + $0xd4] sm:$0xf0] }
  0x7b   :  { %1791 = vmatpush.bf16.msrb.mxu1 %v2797_v33  ;;  %v2618_v1 = vld [vmem:[#allocation5 + $0x450] sm:$0xf0]  ;;  %v3262_v2 = vld [vmem:[#allocation5 + $0x544] sm:$0xf]  ;;  %v3021_v3 = vor.u32 %v3330_v58, %v3018_v59  ;;  %v2304_v57 = vld [vmem:[#allocation5 + $0x1c8] sm:$0xf] }
  0x7c   :  { %1804 = vmatpush.bf16.msrb.mxu2 %v2925_v35  ;;  %v2746_v6 = vld [vmem:[#allocation5 + $0x550] sm:$0xf0]  ;;  %v3294_v7 = vld [vmem:[#allocation5 + $0x644] sm:$0xf]  ;;  %v2621_v11 = vor.u32 %v3230_v0, %v2618_v1  ;;  %v3153_v59 = vld [vmem:[#allocation5 + $0x1d4] sm:$0xf0]  ;;  %v2177_v1 = vor.u32 %v3121_v56, %v2176_v55 }
  0x7d   :  { %1817 = vmatpush.bf16.msrb.mxu3 %v3053_v42  ;;  %v2874_v8 = vld [vmem:[#allocation5 + $0x650] sm:$0xf0]  ;;  %v3326_v9 = vld [vmem:[#allocation5 + $0x744] sm:$0xf]  ;;  %v2749_v12 = vor.u32 %v3262_v2, %v2746_v6  ;;  %v2320_v42 = vld [vmem:[#allocation5 + $0x1e8] sm:$0xf]  ;;  %v2305_v2 = vor.u32 %v3153_v59, %v2304_v57 }
  0x7e   :  { %1779 = vmatpush.bf16.msrb.mxu0 %v2653_v48  ;;  %v3002_v10 = vld [vmem:[#allocation5 + $0x750] sm:$0xf0]  ;;  %v2877_v13 = vor.u32 %v3294_v7, %v2874_v8  ;;  %v3226_v14 = vld [vmem:[#allocation5 + $0x424] sm:$0xf]  ;;  %v2321_v53 = vor.u32 %v3157_v44, %v2320_v42  ;;  %v3217_v0 = vld [vmem:[#allocation5 + $0x3d4] sm:$0xf0] }
  0x7f   :  { %1792 = vmatpush.bf16.msrb.mxu1 %v2781_v49  ;;  %v2602_v15 = vld [vmem:[#allocation5 + $0x430] sm:$0xf0]  ;;  %v3258_v16 = vld [vmem:[#allocation5 + $0x524] sm:$0xf]  ;;  %v3005_v18 = vor.u32 %v3326_v9, %v3002_v10  ;;  %v2576_v49 = vld [vmem:[#allocation5 + $0x3e8] sm:$0xf] }
  0x80   :  { %1805 = vmatpush.bf16.msrb.mxu2 %v2909_v50  ;;  %v2730_v19 = vld [vmem:[#allocation5 + $0x530] sm:$0xf0]  ;;  %v3290_v20 = vld [vmem:[#allocation5 + $0x624] sm:$0xf]  ;;  %v2605_v24 = vor.u32 %v3226_v14, %v2602_v15  ;;  %v3221_v50 = vld [vmem:[#allocation5 + $0x3f4] sm:$0xf0] }
  0x81   :  { %1818 = vmatpush.bf16.msrb.mxu3 %v3037_v54  ;;  %v2858_v21 = vld [vmem:[#allocation5 + $0x630] sm:$0xf0]  ;;  %v3322_v22 = vld [vmem:[#allocation5 + $0x724] sm:$0xf]  ;;  %v2733_v27 = vor.u32 %v3258_v16, %v2730_v19  ;;  %v2449_v54 = vor.u32 %v3189_v46, %v2448_v45  ;;  %v2577_v58 = vor.u32 %v3221_v50, %v2576_v49  ;;  %v2160_v6 = vld [vmem:[#allocation5 + $0xa8] sm:$0xf] }
  0x82   :  { %1780 = vmatpush.bf16.msrb.mxu0 %v2637_v60  ;;  %v2986_v23 = vld [vmem:[#allocation5 + $0x730] sm:$0xf0]  ;;  %v3222_v25 = vld [vmem:[#allocation5 + $0x404] sm:$0xf]  ;;  %v2861_v28 = vor.u32 %v3290_v20, %v2858_v21  ;;  %v2432_v60 = vld [vmem:[#allocation5 + $0x2c8] sm:$0xf] }
  0x83   :  { %1793 = vmatpush.bf16.msrb.mxu1 %v2765_v61  ;;  %v2586_v26 = vld [vmem:[#allocation5 + $0x410] sm:$0xf0]  ;;  %v3254_v29 = vld [vmem:[#allocation5 + $0x504] sm:$0xf]  ;;  %v2989_v32 = vor.u32 %v3322_v22, %v2986_v23  ;;  %v3185_v61 = vld [vmem:[#allocation5 + $0x2d4] sm:$0xf0] }
  0x84   :  { %1806 = vmatpush.bf16.msrb.mxu2 %v2893_v62  ;;  %v2714_v30 = vld [vmem:[#allocation5 + $0x510] sm:$0xf0]  ;;  %v3286_v31 = vld [vmem:[#allocation5 + $0x604] sm:$0xf]  ;;  %v2589_v43 = vor.u32 %v3222_v25, %v2586_v26  ;;  %v2560_v62 = vld [vmem:[#allocation5 + $0x3c8] sm:$0xf] }
  0x85   :  { %1819 = vmatpush.bf16.msrb.mxu3 %v3021_v3  ;;  %v2842_v33 = vld [vmem:[#allocation5 + $0x610] sm:$0xf0]  ;;  %v3318_v35 = vld [vmem:[#allocation5 + $0x704] sm:$0xf]  ;;  %v2717_v47 = vor.u32 %v3254_v29, %v2714_v30  ;;  %v2433_v3 = vor.u32 %v3185_v61, %v2432_v60  ;;  %v3117_v7 = vld [vmem:[#allocation5 + $0xb4] sm:$0xf0]  ;;  %v2561_v9 = vor.u32 %v3217_v0, %v2560_v62 }
  0x86   :  { %1781 = vmatpush.bf16.msrb.mxu0 %v2621_v11  ;;  %v2970_v36 = vld [vmem:[#allocation5 + $0x710] sm:$0xf0]  ;;  %v2845_v48 = vor.u32 %v3286_v31, %v2842_v33  ;;  %v2288_v8 = vld [vmem:[#allocation5 + $0x1a8] sm:$0xf]  ;;  %v3149_v10 = vld [vmem:[#allocation5 + $0x1b4] sm:$0xf0]  ;;  %v2161_v15 = vor.u32 %v3117_v7, %v2160_v6 }
  0x87   :  { %1794 = vmatpush.bf16.msrb.mxu1 %v2749_v12  ;;  %v2973_v51 = vor.u32 %v3318_v35, %v2970_v36  ;;  %v2416_v11 = vld [vmem:[#allocation5 + $0x2a8] sm:$0xf]  ;;  %v3181_v12 = vld [vmem:[#allocation5 + $0x2b4] sm:$0xf0]  ;;  %v2289_v16 = vor.u32 %v3149_v10, %v2288_v8 }
  0x88   :  { %1807 = vmatpush.bf16.msrb.mxu2 %v2877_v13  ;;  %v2544_v13 = vld [vmem:[#allocation5 + $0x3a8] sm:$0xf]  ;;  %v3213_v14 = vld [vmem:[#allocation5 + $0x3b4] sm:$0xf0] }
  0x89   :  { %1820 = vmatpush.bf16.msrb.mxu3 %v3005_v18  ;;  %v2417_v18 = vor.u32 %v3181_v12, %v2416_v11  ;;  %v2144_v19 = vld [vmem:[#allocation5 + $0x88] sm:$0xf]  ;;  %v3113_v20 = vld [vmem:[#allocation5 + $0x94] sm:$0xf0]  ;;  %v2545_v22 = vor.u32 %v3213_v14, %v2544_v13 }
  0x8a   :  { %1782 = vmatpush.bf16.msrb.mxu0 %v2605_v24  ;;  %v2272_v21 = vld [vmem:[#allocation5 + $0x188] sm:$0xf]  ;;  %v3145_v23 = vld [vmem:[#allocation5 + $0x194] sm:$0xf0] }
  0x8b   :  { %1795 = vmatpush.bf16.msrb.mxu1 %v2733_v27  ;;  %v2400_v24 = vld [vmem:[#allocation5 + $0x288] sm:$0xf]  ;;  %v3177_v25 = vld [vmem:[#allocation5 + $0x294] sm:$0xf0]  ;;  %v2273_v29 = vor.u32 %v3145_v23, %v2272_v21 }
  0x8c   :  { %1808 = vmatpush.bf16.msrb.mxu2 %v2861_v28  ;;  %v2528_v26 = vld [vmem:[#allocation5 + $0x388] sm:$0xf]  ;;  %v3209_v27 = vld [vmem:[#allocation5 + $0x394] sm:$0xf0]  ;;  %v2145_v28 = vor.u32 %v3113_v20, %v2144_v19  ;;  %v2401_v30 = vor.u32 %v3177_v25, %v2400_v24 }
  0x8d   :  { %1821 = vmatpush.bf16.msrb.mxu3 %v2989_v32  ;;  %v2128_v31 = vld [vmem:[#allocation5 + $0x68] sm:$0xf]  ;;  %v3109_v32 = vld [vmem:[#allocation5 + $0x74] sm:$0xf0]  ;;  %v2529_v35 = vor.u32 %v3209_v27, %v2528_v26 }
  0x8e   :  { %1783 = vmatpush.bf16.msrb.mxu0 %v2589_v43  ;;  %v2256_v33 = vld [vmem:[#allocation5 + $0x168] sm:$0xf]  ;;  %v3141_v36 = vld [vmem:[#allocation5 + $0x174] sm:$0xf0]  ;;  %v2129_v44 = vor.u32 %v3109_v32, %v2128_v31 }
  0x8f   :  { %1796 = vmatpush.bf16.msrb.mxu1 %v2717_v47  ;;  %v2384_v39 = vld [vmem:[#allocation5 + $0x268] sm:$0xf]  ;;  %v3173_v41 = vld [vmem:[#allocation5 + $0x274] sm:$0xf0]  ;;  %v2257_v45 = vor.u32 %v3141_v36, %v2256_v33 }
  0x90   :  { %1809 = vmatpush.bf16.msrb.mxu2 %v2845_v48  ;;  %v2512_v42 = vld [vmem:[#allocation5 + $0x368] sm:$0xf]  ;;  %v3205_v43 = vld [vmem:[#allocation5 + $0x374] sm:$0xf0]  ;;  %v2385_v46 = vor.u32 %v3173_v41, %v2384_v39 }
  0x91   :  { %1822 = vmatpush.bf16.msrb.mxu3 %v2973_v51  ;;  %1784 = vmatmul.bf16.vlgmr.msrb.gmra.mxu0 %v3507_v37  ;;  %v2112_v47 = vld [vmem:[#allocation5 + $0x48] sm:$0xf]  ;;  %v3105_v48 = vld [vmem:[#allocation5 + $0x54] sm:$0xf0]  ;;  %v2513_v50 = vor.u32 %v3205_v43, %v2512_v42 }
  0x92   :  { %1828 = vmatpush.bf16.msra.mxu0 %v2193_v52  ;;  %1797 = vmatmul.bf16.vlgmr.msrb.gmra.mxu1 %v3511_v40  ;;  %v2240_v49 = vld [vmem:[#allocation5 + $0x148] sm:$0xf]  ;;  %v3137_v51 = vld [vmem:[#allocation5 + $0x154] sm:$0xf0]  ;;  %v2113_v56 = vor.u32 %v3105_v48, %v2112_v47 }
  0x93   :  { %1841 = vmatpush.bf16.msra.mxu1 %v2321_v53  ;;  %1810 = vmatmul.bf16.vlgmr.msrb.gmra.mxu2 %v3505_v34  ;;  %v2368_v52 = vld [vmem:[#allocation5 + $0x248] sm:$0xf]  ;;  %v3169_v53 = vld [vmem:[#allocation5 + $0x254] sm:$0xf0]  ;;  %v2241_v57 = vor.u32 %v3137_v51, %v2240_v49 }
  0x94   :  { %1854 = vmatpush.bf16.msra.mxu2 %v2449_v54  ;;  %1823 = vmatmul.bf16.vlgmr.msrb.gmra.mxu3 %v3509_v38  ;;  %v2496_v54 = vld [vmem:[#allocation5 + $0x348] sm:$0xf]  ;;  %v3201_v55 = vld [vmem:[#allocation5 + $0x354] sm:$0xf0] }
  0x95   :  { %1867 = vmatpush.bf16.msra.mxu3 %v2577_v58  ;;  %v2369_v58 = vor.u32 %v3169_v53, %v2368_v52  ;;  %v2096_v59 = vld [vmem:[#allocation5 + $0x28] sm:$0xf]  ;;  %v3101_v60 = vld [vmem:[#allocation5 + $0x34] sm:$0xf0]  ;;  %v2497_v62 = vor.u32 %v3201_v55, %v2496_v54 }
  0x96   :  { %1829 = vmatpush.bf16.msra.mxu0 %v2177_v1  ;;  %v2224_v61 = vld [vmem:[#allocation5 + $0x128] sm:$0xf]  ;;  %v3133_v0 = vld [vmem:[#allocation5 + $0x134] sm:$0xf0]  ;;  %v2097_v7 = vor.u32 %v3101_v60, %v2096_v59 }
  0x97   :  { %1842 = vmatpush.bf16.msra.mxu1 %v2305_v2  ;;  %v2352_v1 = vld [vmem:[#allocation5 + $0x228] sm:$0xf]  ;;  %v3165_v2 = vld [vmem:[#allocation5 + $0x234] sm:$0xf0]  ;;  %v2225_v10 = vor.u32 %v3133_v0, %v2224_v61 }
  0x98   :  { %1855 = vmatpush.bf16.msra.mxu2 %v2433_v3  ;;  %v2480_v3 = vld [vmem:[#allocation5 + $0x328] sm:$0xf]  ;;  %v3197_v6 = vld [vmem:[#allocation5 + $0x334] sm:$0xf0]  ;;  %v2353_v11 = vor.u32 %v3165_v2, %v2352_v1 }
  0x99   :  { %1868 = vmatpush.bf16.msra.mxu3 %v2561_v9  ;;  %v2080_v8 = vld [vmem:[#allocation5 + $0x8] sm:$0xf]  ;;  %v3097_v9 = vld [vmem:[#allocation5 + $0x14] sm:$0xf0] }
  0x9a   :  { %1830 = vmatpush.bf16.msra.mxu0 %v2161_v15  ;;  %v2208_v12 = vld [vmem:[#allocation5 + $0x108] sm:$0xf]  ;;  %v3129_v13 = vld [vmem:[#allocation5 + $0x114] sm:$0xf0]  ;;  %v2481_v15 = vor.u32 %v3197_v6, %v2480_v3  ;;  %v2081_v23 = vor.u32 %v3097_v9, %v2080_v8 }
  0x9b   :  { %1843 = vmatpush.bf16.msra.mxu1 %v2289_v16  ;;  %v2336_v14 = vld [vmem:[#allocation5 + $0x208] sm:$0xf]  ;;  %v3161_v16 = vld [vmem:[#allocation5 + $0x214] sm:$0xf0]  ;;  %v2209_v27 = vor.u32 %v3129_v13, %v2208_v12 }
  0x9c   :  { %1856 = vmatpush.bf16.msra.mxu2 %v2417_v18  ;;  %v2464_v18 = vld [vmem:[#allocation5 + $0x308] sm:$0xf]  ;;  %v3193_v19 = vld [vmem:[#allocation5 + $0x314] sm:$0xf0] }
  0x9d   :  { %1869 = vmatpush.bf16.msra.mxu3 %v2545_v22  ;;  %v2704_v20 = vld [vmem:[#allocation5 + $0x4e8] sm:$0xf]  ;;  %v3253_v21 = vld [vmem:[#allocation5 + $0x4f4] sm:$0xf0]  ;;  %v2465_v31 = vor.u32 %v3193_v19, %v2464_v18 }
  0x9e   :  { %1831 = vmatpush.bf16.msra.mxu0 %v2145_v28  ;;  %v2832_v22 = vld [vmem:[#allocation5 + $0x5e8] sm:$0xf]  ;;  %v3285_v24 = vld [vmem:[#allocation5 + $0x5f4] sm:$0xf0]  ;;  %v2337_v28 = vor.u32 %v3161_v16, %v2336_v14  ;;  %v2705_v32 = vor.u32 %v3253_v21, %v2704_v20 }
  0x9f   :  { %1844 = vmatpush.bf16.msra.mxu1 %v2273_v29  ;;  %v2960_v25 = vld [vmem:[#allocation5 + $0x6e8] sm:$0xf]  ;;  %v3317_v26 = vld [vmem:[#allocation5 + $0x6f4] sm:$0xf0]  ;;  %v2833_v33 = vor.u32 %v3285_v24, %v2832_v22 }
  0xa0   :  { %1857 = vmatpush.bf16.msra.mxu2 %v2401_v30  ;;  %v3088_v29 = vld [vmem:[#allocation5 + $0x7e8] sm:$0xf]  ;;  %v3349_v30 = vld [vmem:[#allocation5 + $0x7f4] sm:$0xf0] }
  0xa1   :  { %1870 = vmatpush.bf16.msra.mxu3 %v2529_v35  ;;  %v2961_v35 = vor.u32 %v3317_v26, %v2960_v25  ;;  %v2688_v36 = vld [vmem:[#allocation5 + $0x4c8] sm:$0xf]  ;;  %v3249_v39 = vld [vmem:[#allocation5 + $0x4d4] sm:$0xf0]  ;;  %v3089_v42 = vor.u32 %v3349_v30, %v3088_v29 }
  0xa2   :  { %1832 = vmatpush.bf16.msra.mxu0 %v2129_v44  ;;  %v2816_v41 = vld [vmem:[#allocation5 + $0x5c8] sm:$0xf]  ;;  %v3281_v43 = vld [vmem:[#allocation5 + $0x5d4] sm:$0xf0]  ;;  %v2689_v48 = vor.u32 %v3249_v39, %v2688_v36 }
  0xa3   :  { %1845 = vmatpush.bf16.msra.mxu1 %v2257_v45  ;;  %v2944_v44 = vld [vmem:[#allocation5 + $0x6c8] sm:$0xf]  ;;  %v3313_v45 = vld [vmem:[#allocation5 + $0x6d4] sm:$0xf0]  ;;  %v2817_v49 = vor.u32 %v3281_v43, %v2816_v41 }
  0xa4   :  { %1858 = vmatpush.bf16.msra.mxu2 %v2385_v46  ;;  %v3072_v46 = vld [vmem:[#allocation5 + $0x7c8] sm:$0xf]  ;;  %v3345_v47 = vld [vmem:[#allocation5 + $0x7d4] sm:$0xf0] }
  0xa5   :  { %1871 = vmatpush.bf16.msra.mxu3 %v2513_v50  ;;  %v2945_v50 = vor.u32 %v3313_v45, %v2944_v44  ;;  %v2672_v51 = vld [vmem:[#allocation5 + $0x4a8] sm:$0xf]  ;;  %v3245_v52 = vld [vmem:[#allocation5 + $0x4b4] sm:$0xf0]  ;;  %v3073_v54 = vor.u32 %v3345_v47, %v3072_v46  ;;  %v3533_v44 = vld [vmem:[#allocation7] sm:$0xf] }
  0xa6   :  { %1833 = vmatpush.bf16.msra.mxu0 %v2113_v56  ;;  %v2800_v53 = vld [vmem:[#allocation5 + $0x5a8] sm:$0xf]  ;;  %v3277_v55 = vld [vmem:[#allocation5 + $0x5b4] sm:$0xf0]  ;;  %v2673_v60 = vor.u32 %v3245_v52, %v2672_v51 }
  0xa7   :  { %1846 = vmatpush.bf16.msra.mxu1 %v2241_v57  ;;  %v2928_v56 = vld [vmem:[#allocation5 + $0x6a8] sm:$0xf]  ;;  %v3309_v57 = vld [vmem:[#allocation5 + $0x6b4] sm:$0xf0]  ;;  %v2801_v61 = vor.u32 %v3277_v55, %v2800_v53 }
  0xa8   :  { %1859 = vmatpush.bf16.msra.mxu2 %v2369_v58  ;;  %v3056_v58 = vld [vmem:[#allocation5 + $0x7a8] sm:$0xf]  ;;  %v3341_v59 = vld [vmem:[#allocation5 + $0x7b4] sm:$0xf0] }
  0xa9   :  { %1872 = vmatpush.bf16.msra.mxu3 %v2497_v62  ;;  %v2929_v62 = vor.u32 %v3309_v57, %v2928_v56  ;;  %v2656_v0 = vld [vmem:[#allocation5 + $0x488] sm:$0xf]  ;;  %v3241_v1 = vld [vmem:[#allocation5 + $0x494] sm:$0xf0]  ;;  %v3057_v3 = vor.u32 %v3341_v59, %v3056_v58  ;;  %v332_v57 = vperm.slane %v3533_v44, 0 }
  0xaa   :  { %1834 = vmatpush.bf16.msra.mxu0 %v2097_v7  ;;  %v2784_v2 = vld [vmem:[#allocation5 + $0x588] sm:$0xf]  ;;  %v3273_v6 = vld [vmem:[#allocation5 + $0x594] sm:$0xf0] }
  0xab   :  { %1847 = vmatpush.bf16.msra.mxu1 %v2225_v10  ;;  %v2912_v7 = vld [vmem:[#allocation5 + $0x688] sm:$0xf]  ;;  %v3305_v8 = vld [vmem:[#allocation5 + $0x694] sm:$0xf0]  ;;  %v2785_v12 = vor.u32 %v3273_v6, %v2784_v2 }
  0xac   :  { %1860 = vmatpush.bf16.msra.mxu2 %v2353_v11  ;;  %v3040_v9 = vld [vmem:[#allocation5 + $0x788] sm:$0xf]  ;;  %v3337_v10 = vld [vmem:[#allocation5 + $0x794] sm:$0xf0]  ;;  %v2657_v11 = vor.u32 %v3241_v1, %v2656_v0  ;;  %v2913_v13 = vor.u32 %v3305_v8, %v2912_v7 }
  0xad   :  { %1873 = vmatpush.bf16.msra.mxu3 %v2481_v15  ;;  %v2640_v14 = vld [vmem:[#allocation5 + $0x468] sm:$0xf]  ;;  %v3237_v15 = vld [vmem:[#allocation5 + $0x474] sm:$0xf0]  ;;  %v3041_v18 = vor.u32 %v3337_v10, %v3040_v9 }
  0xae   :  { %1835 = vmatpush.bf16.msra.mxu0 %v2081_v23  ;;  %v2768_v16 = vld [vmem:[#allocation5 + $0x568] sm:$0xf]  ;;  %v3269_v19 = vld [vmem:[#allocation5 + $0x574] sm:$0xf0]  ;;  %v2641_v25 = vor.u32 %v3237_v15, %v2640_v14  ;;  %v3155_v14 = vld [vmem:[#allocation5 + $0x1ec] sm:$0xf] }
  0xaf   :  { %1848 = vmatpush.bf16.msra.mxu1 %v2209_v27  ;;  %v2896_v20 = vld [vmem:[#allocation5 + $0x668] sm:$0xf]  ;;  %v3301_v21 = vld [vmem:[#allocation5 + $0x674] sm:$0xf0]  ;;  %v2769_v26 = vor.u32 %v3269_v19, %v2768_v16  ;;  %v3187_v19 = vld [vmem:[#allocation5 + $0x2ec] sm:$0xf] }
  0xb0   :  { %1861 = vmatpush.bf16.msra.mxu2 %v2337_v28  ;;  %v3024_v22 = vld [vmem:[#allocation5 + $0x768] sm:$0xf]  ;;  %v3333_v23 = vld [vmem:[#allocation5 + $0x774] sm:$0xf0]  ;;  %v2897_v27 = vor.u32 %v3301_v21, %v2896_v20  ;;  %v2450_v20 = vld [vmem:[#allocation5 + $0x2f8] sm:$0xf0] }
  0xb1   :  { %1874 = vmatpush.bf16.msra.mxu3 %v2465_v31  ;;  %1836 = vmatmul.bf16.vlgmr.msra.gmra.mxu0 %v3495_v4  ;;  %v2624_v28 = vld [vmem:[#allocation5 + $0x448] sm:$0xf]  ;;  %v3233_v29 = vld [vmem:[#allocation5 + $0x454] sm:$0xf0]  ;;  %v3529_v31 = vpop.f32.mrf.mxu1 }
  0xb2   :  { %1880 = vmatpush.bf16.msrb.mxu0 %v2705_v32  ;;  %1849 = vmatmul.bf16.vlgmr.msra.gmra.mxu1 %v3501_v17  ;;  %v2752_v30 = vld [vmem:[#allocation5 + $0x548] sm:$0xf]  ;;  %v3025_v32 = vor.u32 %v3333_v23, %v3024_v22  ;;  %v3297_v36 = vld [vmem:[#allocation5 + $0x654] sm:$0xf0]  ;;  %v2625_v43 = vor.u32 %v3233_v29, %v2624_v28  ;;  %v3219_v23 = vld [vmem:[#allocation5 + $0x3ec] sm:$0xf]  ;;  %v2453_v29 = vor.u32 %v3187_v19, %v2450_v20 }
  0xb3   :  { %1893 = vmatpush.bf16.msrb.mxu1 %v2833_v33  ;;  %1862 = vmatmul.bf16.vlgmr.msra.gmra.mxu2 %v3493_v63  ;;  %v3265_v33 = vld [vmem:[#allocation5 + $0x554] sm:$0xf0]  ;;  %v3008_v39 = vld [vmem:[#allocation5 + $0x748] sm:$0xf] }
  0xb4   :  { %1906 = vmatpush.bf16.msrb.mxu2 %v2961_v35  ;;  %1875 = vmatmul.bf16.vlgmr.msra.gmra.mxu3 %v3497_v5  ;;  %v2880_v35 = vld [vmem:[#allocation5 + $0x648] sm:$0xf]  ;;  %v3329_v41 = vld [vmem:[#allocation5 + $0x754] sm:$0xf0]  ;;  %v2753_v45 = vor.u32 %v3265_v33, %v2752_v30  ;;  %v2178_v33 = vld [vmem:[#allocation5 + $0xd8] sm:$0xf0] }
  0xb5   :  { %1919 = vmatpush.bf16.msrb.mxu3 %v3089_v42  ;;  %v2881_v46 = vor.u32 %v3297_v36, %v2880_v35  ;;  %v2608_v47 = vld [vmem:[#allocation5 + $0x428] sm:$0xf]  ;;  %v3261_v51 = vld [vmem:[#allocation5 + $0x534] sm:$0xf0]  ;;  %v3151_v35 = vld [vmem:[#allocation5 + $0x1cc] sm:$0xf] }
  0xb6   :  { %1881 = vmatpush.bf16.msrb.mxu0 %v2689_v48  ;;  %v3229_v48 = vld [vmem:[#allocation5 + $0x434] sm:$0xf0]  ;;  %v2864_v52 = vld [vmem:[#allocation5 + $0x628] sm:$0xf] }
  0xb7   :  { %1894 = vmatpush.bf16.msrb.mxu1 %v2817_v49  ;;  %v2736_v49 = vld [vmem:[#allocation5 + $0x528] sm:$0xf]  ;;  %v3293_v53 = vld [vmem:[#allocation5 + $0x634] sm:$0xf0]  ;;  %v2609_v59 = vor.u32 %v3229_v48, %v2608_v47 }
  0xb8   :  { %1907 = vmatpush.bf16.msrb.mxu2 %v2945_v50  ;;  %v3009_v50 = vor.u32 %v3329_v41, %v3008_v39  ;;  %v2992_v55 = vld [vmem:[#allocation5 + $0x728] sm:$0xf]  ;;  %v3325_v56 = vld [vmem:[#allocation5 + $0x734] sm:$0xf0]  ;;  %v2865_v0 = vor.u32 %v3293_v53, %v2864_v52  ;;  %v2306_v39 = vld [vmem:[#allocation5 + $0x1d8] sm:$0xf0] }
  0xb9   :  { %1920 = vmatpush.bf16.msrb.mxu3 %v3073_v54  ;;  %v1629_v24 = vpop.f32.mrf.mxu0  ;;  %v3535_v54 = vpop.f32.mrf.mxu3  ;;  %v2720_v1 = vld [vmem:[#allocation5 + $0x508] sm:$0xf]  ;;  %v3257_v2 = vld [vmem:[#allocation5 + $0x514] sm:$0xf0]  ;;  %v2993_v7 = vor.u32 %v3325_v56, %v2992_v55  ;;  %v3183_v41 = vld [vmem:[#allocation5 + $0x2cc] sm:$0xf] }
  0xba   :  { %1882 = vmatpush.bf16.msrb.mxu0 %v2673_v60  ;;  %v2592_v60 = vld [vmem:[#allocation5 + $0x408] sm:$0xf]  ;;  %v1644_v6 = vpop.f32.mrf.mxu1  ;;  %v3289_v8 = vld [vmem:[#allocation5 + $0x614] sm:$0xf0]  ;;  %v2721_v21 = vor.u32 %v3257_v2, %v2720_v1  ;;  %v3147_v52 = vld [vmem:[#allocation5 + $0x1ac] sm:$0xf] }
  0xbb   :  { %1895 = vmatpush.bf16.msrb.mxu1 %v2801_v61  ;;  %v3225_v61 = vld [vmem:[#allocation5 + $0x414] sm:$0xf0]  ;;  %v2976_v9 = vld [vmem:[#allocation5 + $0x708] sm:$0xf]  ;;  %v2290_v55 = vld [vmem:[#allocation5 + $0x1b8] sm:$0xf0] }
  0xbc   :  { %1908 = vmatpush.bf16.msrb.mxu2 %v2929_v62  ;;  %v2737_v62 = vor.u32 %v3261_v51, %v2736_v49  ;;  %v3321_v10 = vld [vmem:[#allocation5 + $0x714] sm:$0xf0]  ;;  %v2593_v16 = vor.u32 %v3225_v61, %v2592_v60  ;;  %v2162_v51 = vld [vmem:[#allocation5 + $0xb8] sm:$0xf0]  ;;  %v3179_v56 = vld [vmem:[#allocation5 + $0x2ac] sm:$0xf]  ;;  %v2293_v61 = vor.u32 %v3147_v52, %v2290_v55 }
  0xbd   :  { %1921 = vmatpush.bf16.msrb.mxu3 %v3057_v3  ;;  %v2848_v3 = vld [vmem:[#allocation5 + $0x608] sm:$0xf]  ;;  %v2146_v1 = vld [vmem:[#allocation5 + $0x98] sm:$0xf0]  ;;  %v3143_v2 = vld [vmem:[#allocation5 + $0x18c] sm:$0xf] }
  0xbe   :  { %1883 = vmatpush.bf16.msrb.mxu0 %v2657_v11  ;;  %v3531_v42 = vpop.f32.mrf.mxu2  ;;  %v1630_v11 = vadd.f32 %v1629_v24, %v332_v57  ;;  %v2849_v22 = vor.u32 %v3289_v8, %v2848_v3  ;;  %v2418_v57 = vld [vmem:[#allocation5 + $0x2b8] sm:$0xf0] }
  0xbf   :  { %1896 = vmatpush.bf16.msrb.mxu1 %v2785_v12  ;;  %v3123_v12 = vld [vmem:[#allocation5 + $0xec] sm:$0xf]  ;;  %v2274_v6 = vld [vmem:[#allocation5 + $0x198] sm:$0xf0] }
  0xc0   :  { %1909 = vmatpush.bf16.msrb.mxu2 %v2913_v13  ;;  %v2194_v13 = vld [vmem:[#allocation5 + $0xf8] sm:$0xf0]  ;;  %v1643_v30 = vadd.f32 %v3529_v31, %v1630_v11  ;;  %v2309_v31 = vor.u32 %v3151_v35, %v2306_v39  ;;  %v3135_v35 = vld [vmem:[#allocation5 + $0x14c] sm:$0xf] }
  0xc1   :  { %1922 = vmatpush.bf16.msrb.mxu3 %v3041_v18  ;;  %v1631_v58 = vpop.f32.mrf.mxu0  ;;  %v2322_v18 = vld [vmem:[#allocation5 + $0x1f8] sm:$0xf0]  ;;  %v1670_v28 = vpop.f32.mrf.mxu3 }
  0xc2   :  { %1884 = vmatpush.bf16.msrb.mxu0 %v2641_v25  ;;  %v2578_v25 = vld [vmem:[#allocation5 + $0x3f8] sm:$0xf0]  ;;  %v2325_v24 = vor.u32 %v3155_v14, %v2322_v18  ;;  %v1656_v48 = vadd.f32 %v3531_v42, %v1643_v30  ;;  %v3211_v58 = vld [vmem:[#allocation5 + $0x3ac] sm:$0xf] }
  0xc3   :  { %1897 = vmatpush.bf16.msrb.mxu1 %v2769_v26  ;;  %v2977_v26 = vor.u32 %v3321_v10, %v2976_v9  ;;  %v2581_v36 = vor.u32 %v3219_v23, %v2578_v25  ;;  %v2402_v8 = vld [vmem:[#allocation5 + $0x298] sm:$0xf0]  ;;  %v3207_v9 = vld [vmem:[#allocation5 + $0x38c] sm:$0xf] }
  0xc4   :  { %1910 = vmatpush.bf16.msrb.mxu2 %v2897_v27  ;;  %v2197_v27 = vor.u32 %v3123_v12, %v2194_v13  ;;  %v1669_v60 = vadd.f32 %v3535_v54, %v1656_v48  ;;  %v2530_v10 = vld [vmem:[#allocation5 + $0x398] sm:$0xf0]  ;;  %v2277_v13 = vor.u32 %v3143_v2, %v2274_v6  ;;  %v3139_v18 = vld [vmem:[#allocation5 + $0x16c] sm:$0xf] }
  0xc5   :  { %1923 = vmatpush.bf16.msrb.mxu3 %v3025_v32  ;;  %v3119_v32 = vld [vmem:[#allocation5 + $0xcc] sm:$0xf]  ;;  %v2533_v20 = vor.u32 %v3207_v9, %v2530_v10  ;;  %v2386_v23 = vld [vmem:[#allocation5 + $0x278] sm:$0xf0] }
  0xc6   :  { %1885 = vmatpush.bf16.msrb.mxu0 %v2625_v43  ;;  %v1657_v15 = vpop.f32.mrf.mxu2  ;;  %v2434_v43 = vld [vmem:[#allocation5 + $0x2d8] sm:$0xf0]  ;;  %v2181_v47 = vor.u32 %v3119_v32, %v2178_v33  ;;  %v3203_v25 = vld [vmem:[#allocation5 + $0x36c] sm:$0xf] }
  0xc7   :  { %1898 = vmatpush.bf16.msrb.mxu1 %v2753_v45  ;;  %v3215_v45 = vld [vmem:[#allocation5 + $0x3cc] sm:$0xf]  ;;  %v2437_v49 = vor.u32 %v3183_v41, %v2434_v43  ;;  %v2114_v33 = vld [vmem:[#allocation5 + $0x58] sm:$0xf0] }
  0xc8   :  { %1911 = vmatpush.bf16.msrb.mxu2 %v2881_v46  ;;  %v2562_v46 = vld [vmem:[#allocation5 + $0x3d8] sm:$0xf0]  ;;  %v3107_v15 = vld [vmem:[#allocation5 + $0x6c] sm:$0xf] }
  0xc9   :  { %1924 = vmatpush.bf16.msrb.mxu3 %v3009_v50  ;;  %v3115_v50 = vld [vmem:[#allocation5 + $0xac] sm:$0xf]  ;;  %v2565_v53 = vor.u32 %v3215_v45, %v2562_v46  ;;  %v2242_v41 = vld [vmem:[#allocation5 + $0x158] sm:$0xf0] }
  0xca   :  { %1886 = vmatpush.bf16.msrb.mxu0 %v2609_v59  ;;  %v2546_v59 = vld [vmem:[#allocation5 + $0x3b8] sm:$0xf0]  ;;  %v2165_v42 = vor.u32 %v3115_v50, %v2162_v51  ;;  %v3103_v32 = vld [vmem:[#allocation5 + $0x4c] sm:$0xf] }
  0xcb   :  { %1899 = vmatpush.bf16.msrb.mxu1 %v2737_v62  ;;  %v2421_v62 = vor.u32 %v3179_v56, %v2418_v57  ;;  %v2549_v3 = vor.u32 %v3211_v58, %v2546_v59  ;;  %v3167_v43 = vld [vmem:[#allocation5 + $0x24c] sm:$0xf]  ;;  %v2370_v45 = vld [vmem:[#allocation5 + $0x258] sm:$0xf0] }
  0xcc   :  { %1912 = vmatpush.bf16.msrb.mxu2 %v2865_v0  ;;  %v3111_v0 = vld [vmem:[#allocation5 + $0x8c] sm:$0xf]  ;;  %v2498_v48 = vld [vmem:[#allocation5 + $0x358] sm:$0xf0]  ;;  %v2373_v55 = vor.u32 %v3167_v43, %v2370_v45 }
  0xcd   :  { %1925 = vmatpush.bf16.msrb.mxu3 %v2993_v7  ;;  %v3175_v7 = vld [vmem:[#allocation5 + $0x28c] sm:$0xf]  ;;  %v2149_v11 = vor.u32 %v3111_v0, %v2146_v1  ;;  %v2098_v51 = vld [vmem:[#allocation5 + $0x38] sm:$0xf0] }
  0xce   :  { %1887 = vmatpush.bf16.msrb.mxu0 %v2593_v16  ;;  %v2405_v14 = vor.u32 %v3175_v7, %v2402_v8  ;;  %v2130_v16 = vld [vmem:[#allocation5 + $0x78] sm:$0xf0]  ;;  %v3099_v50 = vld [vmem:[#allocation5 + $0x2c] sm:$0xf] }
  0xcf   :  { %1900 = vmatpush.bf16.msrb.mxu1 %v2721_v21  ;;  %v1694_v19 = vpop.f32.mrf.mxu1  ;;  %v2258_v21 = vld [vmem:[#allocation5 + $0x178] sm:$0xf0]  ;;  %v2133_v28 = vor.u32 %v3107_v15, %v2130_v16  ;;  %v3131_v56 = vld [vmem:[#allocation5 + $0x12c] sm:$0xf]  ;;  %v2101_v2 = vor.u32 %v3099_v50, %v2098_v51 }
  0xd0   :  { %1913 = vmatpush.bf16.msrb.mxu2 %v2849_v22  ;;  %v3171_v22 = vld [vmem:[#allocation5 + $0x26c] sm:$0xf]  ;;  %v2226_v57 = vld [vmem:[#allocation5 + $0x138] sm:$0xf0] }
  0xd1   :  { %1926 = vmatpush.bf16.msrb.mxu3 %v2977_v26  ;;  %1888 = vmatmul.bf16.vlgmr.msrb.gmra.mxu0 %v3507_v37  ;;  %v1681_v12 = vpop.f32.mrf.mxu0  ;;  %v2514_v26 = vld [vmem:[#allocation5 + $0x378] sm:$0xf0]  ;;  %v3163_v58 = vld [vmem:[#allocation5 + $0x22c] sm:$0xf]  ;;  %v2229_v8 = vor.u32 %v3131_v56, %v2226_v57 }
  0xd2   :  { %1932 = vmatpush.bf16.msra.mxu0 %v2197_v27  ;;  %1901 = vmatmul.bf16.vlgmr.msrb.gmra.mxu1 %v3511_v40  ;;  %v1682_v54 = vadd.f32 %v1681_v12, %v1669_v60  ;;  %v2482_v0 = vld [vmem:[#allocation5 + $0x338] sm:$0xf0]  ;;  %v3127_v7 = vld [vmem:[#allocation5 + $0x10c] sm:$0xf] }
  0xd3   :  { %1945 = vmatpush.bf16.msra.mxu1 %v2325_v24  ;;  %1914 = vmatmul.bf16.vlgmr.msrb.gmra.mxu2 %v3505_v34  ;;  %v2261_v24 = vor.u32 %v3139_v18, %v2258_v21  ;;  %v2082_v6 = vld [vmem:[#allocation5 + $0x18] sm:$0xf0]  ;;  %v3251_v18 = vld [vmem:[#allocation5 + $0x4ec] sm:$0xf] }
  0xd4   :  { %1958 = vmatpush.bf16.msra.mxu2 %v2453_v29  ;;  %1927 = vmatmul.bf16.vlgmr.msrb.gmra.mxu3 %v3509_v38  ;;  %v1695_v27 = vadd.f32 %v1694_v19, %v1682_v54  ;;  %v2389_v29 = vor.u32 %v3171_v22, %v2386_v23  ;;  %v2210_v10 = vld [vmem:[#allocation5 + $0x118] sm:$0xf0]  ;;  %v3191_v54 = vld [vmem:[#allocation5 + $0x30c] sm:$0xf] }
  0xd5   :  { %1971 = vmatpush.bf16.msra.mxu3 %v2581_v36  ;;  %v2517_v36 = vor.u32 %v3203_v25, %v2514_v26  ;;  %v2466_v15 = vld [vmem:[#allocation5 + $0x318] sm:$0xf0]  ;;  %v3315_v23 = vld [vmem:[#allocation5 + $0x6ec] sm:$0xf]  ;;  %v2213_v26 = vor.u32 %v3127_v7, %v2210_v10 }
  0xd6   :  { %1933 = vmatpush.bf16.msra.mxu0 %v2181_v47  ;;  %v1707_v30 = vpop.f32.mrf.mxu2  ;;  %v3199_v47 = vld [vmem:[#allocation5 + $0x34c] sm:$0xf]  ;;  %v2706_v19 = vld [vmem:[#allocation5 + $0x4f8] sm:$0xf0] }
  0xd7   :  { %1946 = vmatpush.bf16.msra.mxu1 %v2309_v31  ;;  %v1708_v39 = vadd.f32 %v1707_v30, %v1695_v27  ;;  %v2117_v31 = vor.u32 %v3103_v32, %v2114_v33  ;;  %v1696_v59 = vpop.f32.mrf.mxu1  ;;  %v2834_v22 = vld [vmem:[#allocation5 + $0x5f8] sm:$0xf0]  ;;  %v2709_v30 = vor.u32 %v3251_v18, %v2706_v19  ;;  %v3311_v45 = vld [vmem:[#allocation5 + $0x6cc] sm:$0xf] }
  0xd8   :  { %1959 = vmatpush.bf16.msra.mxu2 %v2437_v49  ;;  %v2962_v25 = vld [vmem:[#allocation5 + $0x6f8] sm:$0xf0]  ;;  %v3243_v51 = vld [vmem:[#allocation5 + $0x4ac] sm:$0xf] }
  0xd9   :  { %1972 = vmatpush.bf16.msra.mxu3 %v2565_v53  ;;  %v1720_v46 = vpop.f32.mrf.mxu3  ;;  %v1683_v52 = vpop.f32.mrf.mxu0  ;;  %v2245_v53 = vor.u32 %v3135_v35, %v2242_v41  ;;  %v2965_v33 = vor.u32 %v3315_v23, %v2962_v25  ;;  %v3247_v35 = vld [vmem:[#allocation5 + $0x4cc] sm:$0xf]  ;;  %v2818_v43 = vld [vmem:[#allocation5 + $0x5d8] sm:$0xf0] }
  0xda   :  { %1934 = vmatpush.bf16.msra.mxu0 %v2165_v42  ;;  %v1721_v49 = vadd.f32 %v1720_v46, %v1708_v39  ;;  %v2501_v42 = vor.u32 %v3199_v47, %v2498_v48  ;;  %v3279_v39 = vld [vmem:[#allocation5 + $0x5cc] sm:$0xf]  ;;  %v2946_v46 = vld [vmem:[#allocation5 + $0x6d8] sm:$0xf0] }
  0xdb   :  { %1947 = vmatpush.bf16.msra.mxu1 %v2293_v61  ;;  %v2354_v61 = vld [vmem:[#allocation5 + $0x238] sm:$0xf0]  ;;  %v3343_v47 = vld [vmem:[#allocation5 + $0x7cc] sm:$0xf]  ;;  %v2949_v50 = vor.u32 %v3311_v45, %v2946_v46 }
  0xdc   :  { %1960 = vmatpush.bf16.msra.mxu2 %v2421_v62  ;;  %vm2036_vm0 = vcmp.ge.f32.partialorder %v1721_v49, 0.0  ;;  %v2040_v60 = vmul.f32 0.1, %v1721_v49  ;;  %v3195_v62 = vld [vmem:[#allocation5 + $0x32c] sm:$0xf]  ;;  %v2357_v9 = vor.u32 %v3163_v58, %v2354_v61 }
  0xdd   :  { %1973 = vmatpush.bf16.msra.mxu3 %v2549_v3  ;;  %v3095_v3 = vld [vmem:[#allocation5 + $0xc] sm:$0xf]  ;;  %v3074_v48 = vld [vmem:[#allocation5 + $0x7d8] sm:$0xf0] }
  0xde   :  { %1935 = vmatpush.bf16.msra.mxu0 %v2149_v11  ;;  %v2044_v1 = vsel %vm2036_vm0, %v1721_v49, %v2040_v60  ;;  %v3159_v11 = vld [vmem:[#allocation5 + $0x20c] sm:$0xf]  ;;  %v1709_v12 = vpop.f32.mrf.mxu2  ;;  %v2085_v21 = vor.u32 %v3095_v3, %v2082_v6  ;;  %v2821_v49 = vor.u32 %v3279_v39, %v2818_v43  ;;  %v2674_v52 = vld [vmem:[#allocation5 + $0x4b8] sm:$0xf0] }
  0xdf   :  { %1948 = vmatpush.bf16.msra.mxu1 %v2277_v13  ;;  %2048 = vst [vmem:[#allocation8] sm:$0xff] %v2044_v1  ;;  %v2485_v13 = vor.u32 %v3195_v62, %v2482_v0  ;;  %v2802_v56 = vld [vmem:[#allocation5 + $0x5b8] sm:$0xf0]  ;;  %v3307_v57 = vld [vmem:[#allocation5 + $0x6ac] sm:$0xf]  ;;  %v2677_v60 = vor.u32 %v3243_v51, %v2674_v52 }
  0xe0   :  { %1961 = vmatpush.bf16.msra.mxu2 %v2405_v14  ;;  %v2338_v14 = vld [vmem:[#allocation5 + $0x218] sm:$0xf0]  ;;  %v3339_v59 = vld [vmem:[#allocation5 + $0x7ac] sm:$0xf] }
  0xe1   :  { %1974 = vmatpush.bf16.msra.mxu3 %v2533_v20  ;;  %v1722_v16 = vpop.f32.mrf.mxu3  ;;  %v3283_v20 = vld [vmem:[#allocation5 + $0x5ec] sm:$0xf]  ;;  %v2341_v27 = vor.u32 %v3159_v11, %v2338_v14  ;;  %v2930_v58 = vld [vmem:[#allocation5 + $0x6b8] sm:$0xf0] }
  0xe2   :  { %1936 = vmatpush.bf16.msra.mxu0 %v2133_v28  ;;  %v3347_v28 = vld [vmem:[#allocation5 + $0x7ec] sm:$0xf]  ;;  %v2837_v32 = vor.u32 %v3283_v20, %v2834_v22  ;;  %v2933_v62 = vor.u32 %v3307_v57, %v2930_v58  ;;  %v2658_v1 = vld [vmem:[#allocation5 + $0x498] sm:$0xf0] }
  0xe3   :  { %1949 = vmatpush.bf16.msra.mxu1 %v2261_v24  ;;  %v3090_v24 = vld [vmem:[#allocation5 + $0x7f8] sm:$0xf0]  ;;  %v3239_v0 = vld [vmem:[#allocation5 + $0x48c] sm:$0xf] }
  0xe4   :  { %1962 = vmatpush.bf16.msra.mxu2 %v2389_v29  ;;  %v2469_v29 = vor.u32 %v3191_v54, %v2466_v15  ;;  %v3093_v41 = vor.u32 %v3347_v28, %v3090_v24  ;;  %v2786_v3 = vld [vmem:[#allocation5 + $0x598] sm:$0xf0]  ;;  %v3303_v6 = vld [vmem:[#allocation5 + $0x68c] sm:$0xf] }
  0xe5   :  { %1975 = vmatpush.bf16.msra.mxu3 %v2517_v36  ;;  %v2690_v36 = vld [vmem:[#allocation5 + $0x4d8] sm:$0xf0]  ;;  %v3335_v7 = vld [vmem:[#allocation5 + $0x78c] sm:$0xf] }
  0xe6   :  { %1937 = vmatpush.bf16.msra.mxu0 %v2117_v31  ;;  %v2693_v31 = vor.u32 %v3247_v35, %v2690_v36  ;;  %v3235_v11 = vld [vmem:[#allocation5 + $0x46c] sm:$0xf]  ;;  %v2642_v12 = vld [vmem:[#allocation5 + $0x478] sm:$0xf0] }
  0xe7   :  { %1950 = vmatpush.bf16.msra.mxu1 %v2245_v53  ;;  %v3275_v53 = vld [vmem:[#allocation5 + $0x5ac] sm:$0xf]  ;;  %v2770_v15 = vld [vmem:[#allocation5 + $0x578] sm:$0xf0] }
  0xe8   :  { %1963 = vmatpush.bf16.msra.mxu2 %v2373_v55  ;;  %v3077_v55 = vor.u32 %v3343_v47, %v3074_v48  ;;  %v2805_v61 = vor.u32 %v3275_v53, %v2802_v56  ;;  %v3299_v16 = vld [vmem:[#allocation5 + $0x66c] sm:$0xf]  ;;  %v2898_v18 = vld [vmem:[#allocation5 + $0x678] sm:$0xf0]  ;;  %v333_v56 = vperm.slane %v3533_v44, 1 }
  0xe9   :  { %1976 = vmatpush.bf16.msra.mxu3 %v2501_v42  ;;  %v3058_v42 = vld [vmem:[#allocation5 + $0x7b8] sm:$0xf0]  ;;  %v3331_v19 = vld [vmem:[#allocation5 + $0x76c] sm:$0xf]  ;;  %v2901_v23 = vor.u32 %v3299_v16, %v2898_v18 }
  0xea   :  { %1938 = vmatpush.bf16.msra.mxu0 %v2101_v2  ;;  %v3061_v2 = vor.u32 %v3339_v59, %v3058_v42  ;;  %v3026_v20 = vld [vmem:[#allocation5 + $0x778] sm:$0xf0]  ;;  %v3231_v25 = vld [vmem:[#allocation5 + $0x44c] sm:$0xf] }
  0xeb   :  { %1951 = vmatpush.bf16.msra.mxu1 %v2229_v8  ;;  %v3042_v8 = vld [vmem:[#allocation5 + $0x798] sm:$0xf0]  ;;  %v3029_v24 = vor.u32 %v3331_v19, %v3026_v20  ;;  %v3327_v35 = vld [vmem:[#allocation5 + $0x74c] sm:$0xf] }
  0xec   :  { %1964 = vmatpush.bf16.msra.mxu2 %v2357_v9  ;;  %v3045_v54 = vor.u32 %v3335_v7, %v3042_v8  ;;  %v3010_v36 = vld [vmem:[#allocation5 + $0x758] sm:$0xf0]  ;;  %v3227_v46 = vld [vmem:[#allocation5 + $0x42c] sm:$0xf] }
  0xed   :  { %1977 = vmatpush.bf16.msra.mxu3 %v2485_v13  ;;  %v3267_v13 = vld [vmem:[#allocation5 + $0x56c] sm:$0xf]  ;;  %v2610_v47 = vld [vmem:[#allocation5 + $0x438] sm:$0xf0] }
  0xee   :  { %1939 = vmatpush.bf16.msra.mxu0 %v2085_v21  ;;  %v3549_v9 = vpop.f32.mrf.mxu0  ;;  %v2645_v21 = vor.u32 %v3235_v11, %v2642_v12  ;;  %v2773_v22 = vor.u32 %v3267_v13, %v2770_v15  ;;  %v3259_v48 = vld [vmem:[#allocation5 + $0x52c] sm:$0xf]  ;;  %v2866_v52 = vld [vmem:[#allocation5 + $0x638] sm:$0xf0]  ;;  %v2613_v57 = vor.u32 %v3227_v46, %v2610_v47 }
  0xef   :  { %1952 = vmatpush.bf16.msra.mxu1 %v2213_v26  ;;  %v3551_v14 = vpop.f32.mrf.mxu1  ;;  %v2626_v26 = vld [vmem:[#allocation5 + $0x458] sm:$0xf0]  ;;  %v3291_v51 = vld [vmem:[#allocation5 + $0x62c] sm:$0xf]  ;;  %v1734_v7 = vadd.f32 %v3549_v9, %v333_v56 }
  0xf0   :  { %1965 = vmatpush.bf16.msra.mxu2 %v2341_v27  ;;  %v3263_v27 = vld [vmem:[#allocation5 + $0x54c] sm:$0xf]  ;;  %v2629_v39 = vor.u32 %v3231_v25, %v2626_v26  ;;  %v2869_v59 = vor.u32 %v3291_v51, %v2866_v52 }
  0xf1   :  { %1978 = vmatpush.bf16.msra.mxu3 %v2469_v29  ;;  %1940 = vmatmul.bf16.vlgmr.msra.gmra.mxu0 %v3495_v4  ;;  %v2661_v4 = vor.u32 %v3239_v0, %v2658_v1  ;;  %v2754_v29 = vld [vmem:[#allocation5 + $0x558] sm:$0xf0]  ;;  %v3323_v53 = vld [vmem:[#allocation5 + $0x72c] sm:$0xf]  ;;  %v1747_v11 = vadd.f32 %v3551_v14, %v1734_v7 }
  0xf2   :  { %1984 = vmatpush.bf16.msrb.mxu0 %v2709_v30  ;;  %1953 = vmatmul.bf16.vlgmr.msra.gmra.mxu1 %v3501_v17  ;;  %v3295_v30 = vld [vmem:[#allocation5 + $0x64c] sm:$0xf]  ;;  %v2757_v43 = vor.u32 %v3263_v27, %v2754_v29  ;;  %v2722_v1 = vld [vmem:[#allocation5 + $0x518] sm:$0xf0]  ;;  %v334_v29 = vperm.slane %v3533_v44, 2 }
  0xf3   :  { %1997 = vmatpush.bf16.msrb.mxu1 %v2837_v32  ;;  %1966 = vmatmul.bf16.vlgmr.msra.gmra.mxu2 %v3493_v63  ;;  %v3271_v63 = vld [vmem:[#allocation5 + $0x58c] sm:$0xf]  ;;  %v2882_v32 = vld [vmem:[#allocation5 + $0x658] sm:$0xf0] }
  0xf4   :  { %2010 = vmatpush.bf16.msrb.mxu2 %v2965_v33  ;;  %1979 = vmatmul.bf16.vlgmr.msra.gmra.mxu3 %v3497_v5  ;;  %v2914_v5 = vld [vmem:[#allocation5 + $0x698] sm:$0xf0]  ;;  %v2789_v17 = vor.u32 %v3271_v63, %v2786_v3  ;;  %v2885_v45 = vor.u32 %v3295_v30, %v2882_v32  ;;  %v3223_v42 = vld [vmem:[#allocation5 + $0x40c] sm:$0xf] }
  0xf5   :  { %2023 = vmatpush.bf16.msrb.mxu3 %v3093_v41  ;;  %v2917_v10 = vor.u32 %v3303_v6, %v2914_v5  ;;  %v3287_v63 = vld [vmem:[#allocation5 + $0x60c] sm:$0xf]  ;;  %v2978_v5 = vld [vmem:[#allocation5 + $0x718] sm:$0xf0] }
  0xf6   :  { %1985 = vmatpush.bf16.msrb.mxu0 %v2693_v31  ;;  %v1759_v28 = vpop.f32.mrf.mxu2  ;;  %v1735_v41 = vpop.f32.mrf.mxu0  ;;  %v3319_v6 = vld [vmem:[#allocation5 + $0x70c] sm:$0xf] }
  0xf7   :  { %1998 = vmatpush.bf16.msrb.mxu1 %v2821_v49  ;;  %v1772_v33 = vpop.f32.mrf.mxu3  ;;  %v1748_v31 = vpop.f32.mrf.mxu1  ;;  %v3013_v49 = vor.u32 %v3327_v35, %v3010_v36  ;;  %v1760_v12 = vadd.f32 %v1759_v28, %v1747_v11 }
  0xf8   :  { %2011 = vmatpush.bf16.msrb.mxu2 %v2949_v50  ;;  %v2738_v50 = vld [vmem:[#allocation5 + $0x538] sm:$0xf0] }
  0xf9   :  { %2024 = vmatpush.bf16.msrb.mxu3 %v3077_v55  ;;  %v2994_v55 = vld [vmem:[#allocation5 + $0x738] sm:$0xf0]  ;;  %v2741_v58 = vor.u32 %v3259_v48, %v2738_v50  ;;  %v1773_v9 = vadd.f32 %v1772_v33, %v1760_v12 }
  0xfa   :  { %1986 = vmatpush.bf16.msrb.mxu0 %v2677_v60  ;;  %v2594_v60 = vld [vmem:[#allocation5 + $0x418] sm:$0xf0]  ;;  %v2997_v0 = vor.u32 %v3323_v53, %v2994_v55 }
  0xfb   :  { %1999 = vmatpush.bf16.msrb.mxu1 %v2805_v61  ;;  %v3255_v61 = vld [vmem:[#allocation5 + $0x50c] sm:$0xf]  ;;  %v2597_v8 = vor.u32 %v3223_v42, %v2594_v60 }
  0xfc   :  { %2012 = vmatpush.bf16.msrb.mxu2 %v2933_v62 }
  0xfd   :  { %2025 = vmatpush.bf16.msrb.mxu3 %v3061_v2  ;;  %v2850_v2 = vld [vmem:[#allocation5 + $0x618] sm:$0xf0] }
  0xfe   :  { %1987 = vmatpush.bf16.msrb.mxu0 %v2661_v4  ;;  %v1761_v62 = vpop.f32.mrf.mxu2  ;;  %v2725_v4 = vor.u32 %v3255_v61, %v2722_v1 }
  0xff   :  { %2000 = vmatpush.bf16.msrb.mxu1 %v2789_v17  ;;  %v1774_v3 = vpop.f32.mrf.mxu3  ;;  %v2853_v17 = vor.u32 %v3287_v63, %v2850_v2  ;;  %v335_v62 = vperm.slane %v3533_v44, 3 }
 0x100   :  { %2013 = vmatpush.bf16.msrb.mxu2 %v2917_v10  ;;  %v2981_v10 = vor.u32 %v3319_v6, %v2978_v5 }
 0x101   :  { %2026 = vmatpush.bf16.msrb.mxu3 %v3045_v54 }
 0x102   :  { %1988 = vmatpush.bf16.msrb.mxu0 %v2645_v21 }
 0x103   :  { %2001 = vmatpush.bf16.msrb.mxu1 %v2773_v22 }
 0x104   :  { %2014 = vmatpush.bf16.msrb.mxu2 %v2901_v23 }
 0x105   :  { %2027 = vmatpush.bf16.msrb.mxu3 %v3029_v24 }
 0x106   :  { %1989 = vmatpush.bf16.msrb.mxu0 %v2629_v39 }
 0x107   :  { %2002 = vmatpush.bf16.msrb.mxu1 %v2757_v43 }
 0x108   :  { %2015 = vmatpush.bf16.msrb.mxu2 %v2885_v45 }
 0x109   :  { %2028 = vmatpush.bf16.msrb.mxu3 %v3013_v49 }
 0x10a   :  { %1990 = vmatpush.bf16.msrb.mxu0 %v2613_v57 }
 0x10b   :  { %2003 = vmatpush.bf16.msrb.mxu1 %v2741_v58 }
 0x10c   :  { %2016 = vmatpush.bf16.msrb.mxu2 %v2869_v59 }
 0x10d   :  { %2029 = vmatpush.bf16.msrb.mxu3 %v2997_v0 }
 0x10e   :  { %1991 = vmatpush.bf16.msrb.mxu0 %v2597_v8  ;;  %v1785_v13 = vpop.f32.mrf.mxu0 }
 0x10f   :  { %2004 = vmatpush.bf16.msrb.mxu1 %v2725_v4  ;;  %v1786_v54 = vadd.f32 %v1785_v13, %v1773_v9  ;;  %v1798_v15 = vpop.f32.mrf.mxu1 }
 0x110   :  { %2017 = vmatpush.bf16.msrb.mxu2 %v2853_v17 }
 0x111   :  { %2030 = vmatpush.bf16.msrb.mxu3 %v2981_v10  ;;  %1992 = vmatmul.bf16.vlgmr.msrb.gmra.mxu0 %v3507_v37  ;;  %v1799_v16 = vadd.f32 %v1798_v15, %v1786_v54 }
 0x112   :  { %2005 = vmatmul.bf16.vlgmr.msrb.gmra.mxu1 %v3511_v40 }
 0x113   :  { %2018 = vmatmul.bf16.vlgmr.msrb.gmra.mxu2 %v3505_v34 }
 0x114   :  { %2031 = vmatmul.bf16.vlgmr.msrb.gmra.mxu3 %v3509_v38 }
 0x116   :  { %v1811_v18 = vpop.f32.mrf.mxu2  ;;  %v1787_v21 = vpop.f32.mrf.mxu0 }
 0x117   :  { %v1812_v14 = vadd.f32 %v1811_v18, %v1799_v16  ;;  %v1824_v19 = vpop.f32.mrf.mxu3  ;;  %v1800_v22 = vpop.f32.mrf.mxu1 }
 0x119   :  { %v1825_v20 = vadd.f32 %v1824_v19, %v1812_v14 }
 0x11b   :  { %vm2037_vm1 = vcmp.ge.f32.partialorder %v1825_v20, 0.0  ;;  %v2041_v37 = vmul.f32 0.1, %v1825_v20 }
 0x11d   :  { %v2045_v23 = vsel %vm2037_vm1, %v1825_v20, %v2041_v37 }
 0x11e   :  { %2049 = vst [vmem:[#allocation8 + $0x8] sm:$0xff] %v2045_v23  ;;  %v1813_v40 = vpop.f32.mrf.mxu2 }
 0x11f   :  { %v1826_v25 = vpop.f32.mrf.mxu3 }
 0x12e   :  { %v1837_v34 = vpop.f32.mrf.mxu0 }
 0x12f   :  { %v1850_v26 = vpop.f32.mrf.mxu1  ;;  %v1838_v33 = vadd.f32 %v1837_v34, %v334_v29 }
 0x131   :  { %v1851_v35 = vadd.f32 %v1850_v26, %v1838_v33 }
 0x136   :  { %v1863_v38 = vpop.f32.mrf.mxu2  ;;  %v1839_v28 = vpop.f32.mrf.mxu0 }
 0x137   :  { %v1876_v27 = vpop.f32.mrf.mxu3  ;;  %v1852_v24 = vpop.f32.mrf.mxu1  ;;  %v1864_v36 = vadd.f32 %v1863_v38, %v1851_v35 }
 0x139   :  { %v1877_v39 = vadd.f32 %v1876_v27, %v1864_v36 }
 0x13e   :  { %v1865_v30 = vpop.f32.mrf.mxu2 }
 0x13f   :  { %v1878_v32 = vpop.f32.mrf.mxu3 }
 0x14e   :  { %v1889_v41 = vpop.f32.mrf.mxu0 }
 0x14f   :  { %v1890_v43 = vadd.f32 %v1889_v41, %v1877_v39  ;;  %v1902_v45 = vpop.f32.mrf.mxu1 }
 0x151   :  { %v1903_v46 = vadd.f32 %v1902_v45, %v1890_v43 }
 0x156   :  { %v1915_v47 = vpop.f32.mrf.mxu2  ;;  %v1891_v50 = vpop.f32.mrf.mxu0 }
 0x157   :  { %v1916_v48 = vadd.f32 %v1915_v47, %v1903_v46  ;;  %v1928_v31 = vpop.f32.mrf.mxu3  ;;  %v1904_v51 = vpop.f32.mrf.mxu1 }
 0x159   :  { %v1929_v49 = vadd.f32 %v1928_v31, %v1916_v48 }
 0x15b   :  { %vm2038_vm2 = vcmp.ge.f32.partialorder %v1929_v49, 0.0  ;;  %v2042_v52 = vmul.f32 0.1, %v1929_v49 }
 0x15d   :  { %v2046_v53 = vsel %vm2038_vm2, %v1929_v49, %v2042_v52 }
 0x15e   :  { %2050 = vst [vmem:[#allocation8 + $0x10] sm:$0xff] %v2046_v53  ;;  %v1917_v55 = vpop.f32.mrf.mxu2 }
 0x15f   :  { %v1930_v56 = vpop.f32.mrf.mxu3 }
 0x16e   :  { %v1941_v57 = vpop.f32.mrf.mxu0 }
 0x16f   :  { %v1954_v58 = vpop.f32.mrf.mxu1  ;;  %v1942_v63 = vadd.f32 %v1941_v57, %v335_v62 }
 0x171   :  { %v1955_v2 = vadd.f32 %v1954_v58, %v1942_v63 }
 0x176   :  { %v1967_v59 = vpop.f32.mrf.mxu2  ;;  %v1943_v60 = vpop.f32.mrf.mxu0 }
 0x177   :  { %v1980_v42 = vpop.f32.mrf.mxu3  ;;  %v1956_v61 = vpop.f32.mrf.mxu1  ;;  %v1968_v3 = vadd.f32 %v1967_v59, %v1955_v2 }
 0x179   :  { %v1981_v6 = vadd.f32 %v1980_v42, %v1968_v3 }
 0x17e   :  { %v1969_v0 = vpop.f32.mrf.mxu2 }
 0x17f   :  { %v1982_v1 = vpop.f32.mrf.mxu3 }
 0x18e   :  { %v1993_v5 = vpop.f32.mrf.mxu0 }
 0x18f   :  { %v2006_v7 = vpop.f32.mrf.mxu1  ;;  %v1994_v8 = vadd.f32 %v1993_v5, %v1981_v6 }
 0x191   :  { %v2007_v4 = vadd.f32 %v2006_v7, %v1994_v8 }
 0x196   :  { %v2019_v17 = vpop.f32.mrf.mxu2  ;;  %v1995_v12 = vpop.f32.mrf.mxu0 }
 0x197   :  { %v2020_v10 = vadd.f32 %v2019_v17, %v2007_v4  ;;  %v2032_v11 = vpop.f32.mrf.mxu3  ;;  %v2008_v9 = vpop.f32.mrf.mxu1 }
 0x199   :  { %v2033_v13 = vadd.f32 %v2032_v11, %v2020_v10 }
 0x19b   :  { %vm2039_vm3 = vcmp.ge.f32.partialorder %v2033_v13, 0.0  ;;  %v2043_v44 = vmul.f32 0.1, %v2033_v13 }
 0x19d   :  { %v2047_v54 = vsel %vm2039_vm3, %v2033_v13, %v2043_v44 }
 0x19e   :  { %2051 = vst [vmem:[#allocation8 + $0x18] sm:$0xff] %v2047_v54  ;;  %v2021_v15 = vpop.f32.mrf.mxu2 }
 0x19f   :  { %v2034_v16 = vpop.f32.mrf.mxu3  ;;  %2062 = dma.vmem_to_hbm [thread:$0]  %s2058_s2, 512, %s2060_s30, [#allocation4]  }
 0x1a0   :  { %3456 = dma.done.wait [#allocation4], 512  }
 0x1a1   :  { %3457 = vsyncadd [#allocation4], 4294966784 }
 0x1a2   :  { %2067 = vsyncpa [#allocation3], 1 }
 0x1a3   :  { %2068 = vsyncpa [#allocation6], 1 }
 0x1a4   :  { %2069 = vsyncpa [#allocation4], 1 }

</bundles_post_ra>
